<compile_context>
chip_gen: v6e
topology: v6e:2x2x1
jax: 0.10.0
libtpu: 0.0.40
codegen_flags: <defaults>
</compile_context>

<pallas_src>
import jax
import jax.numpy as jnp
from jax.experimental import pallas as pl
from jax.experimental.pallas import tpu as pltpu


# ----------------------------------------------------------------------------
# Kernel
# ----------------------------------------------------------------------------
def make_kernel(num_layers, seq_len, b_pad, input_dim, hidden_dim, n_fc, fc_pad):
    H = hidden_dim
    T = seq_len
    Bp = b_pad
    D = input_dim

    def kernel(x_ref, lstm_ref, fcw_ref, fcb_ref, out_ref):
        # x_ref:    (T, Bp, D)       time-major, batch zero-padded to Bp
        # lstm_ref: (L, R, 4H)       packed [W_ih^T ; W_hh^T ; (b_ih+b_hh)] rows,
        #                            gate columns permuted to [i, f, o, g],
        #                            g block pre-scaled by 2 (zero row padding)
        # fcw_ref:  (n_fc, P, P)     zero-padded FC weights (in, out) -> (P, P)
        # fcb_ref:  (n_fc, 1, P)     zero-padded FC biases
        # out_ref:  (Bp, P)          lane-dense output slab; col 0 = prediction

        seq = x_ref[...].reshape(T * Bp, D)  # time-major sequence for layer 0

        h_last = None
        for l in range(num_layers):
            in_dim = D if l == 0 else H
            w_all = lstm_ref[l]                              # (R, 4H)
            wih = w_all[0:in_dim, :]                         # (in, 4H)
            whh = w_all[in_dim:in_dim + H, :]                # (H, 4H)
            b = w_all[in_dim + H:in_dim + H + 1, :]          # (1, 4H)

            # Hoisted input projection + bias for the whole sequence: one matmul.
            gx = jnp.dot(seq, wih, preferred_element_type=jnp.float32) + b

            h = jnp.zeros((Bp, H), jnp.float32)
            c = jnp.zeros((Bp, H), jnp.float32)
            hs = []
            for t in range(T):  # static trip count -> fully unrolled
                gates = gx[t * Bp:(t + 1) * Bp, :] + jnp.dot(
                    h, whh, preferred_element_type=jnp.float32)
                # One sigmoid over the full (Bp, 4H) tile; gate layout [i, f, o, g]
                # with the g block pre-scaled by 2: tanh(z) = 2*sigmoid(2z) - 1.
                s = jax.nn.sigmoid(gates)
                i_g = s[:, 0 * H:1 * H]
                f_g = s[:, 1 * H:2 * H]
                o_g = s[:, 2 * H:3 * H]
                g_g = 2.0 * s[:, 3 * H:4 * H] - 1.0
                c = f_g * c + i_g * g_g
                h = o_g * jnp.tanh(c)
                if l < num_layers - 1:
                    hs.append(h)
            if l < num_layers - 1:
                # Full hidden sequence (time-major) feeds the next layer.
                # Inter-layer dropout is identity in eval mode.
                seq = jnp.concatenate(hs, axis=0)            # (T*Bp, H)
            h_last = h                                       # == out[:, -1, :]

        # FC head (dropout = identity). Lane-dense (Bp, P) slab throughout.
        if fc_pad > H:
            out = jnp.concatenate(
                [h_last, jnp.zeros((Bp, fc_pad - H), jnp.float32)], axis=1)
        else:
            out = h_last
        for i in range(n_fc):
            out = jnp.dot(out, fcw_ref[i],
                          preferred_element_type=jnp.float32) + fcb_ref[i]
            if i < n_fc - 1:  # relu on fc1, fc2, fc3 only
                out = jnp.maximum(out, 0.0)
        out_ref[...] = out

    return kernel


# ----------------------------------------------------------------------------
# Parameter packing (host side, plain JAX)
# ----------------------------------------------------------------------------
def _permute_gate_cols(m, H):
    """[i, f, g, o] -> [i, f, o, g], with the g block pre-scaled by 2."""
    return jnp.concatenate(
        [m[:, 0:H], m[:, H:2 * H], m[:, 3 * H:4 * H], 2.0 * m[:, 2 * H:3 * H]],
        axis=1)


def pack_lstm(lstm_params, input_dim, hidden_dim):
    H = hidden_dim
    num_layers = len(lstm_params)
    rows = max((input_dim if l == 0 else H) + H + 1 for l in range(num_layers))
    rows = ((rows + 7) // 8) * 8  # sublane-align the packed row count
    packed = []
    for l, (wih, whh, b_ih, b_hh) in enumerate(lstm_params):
        b = (b_ih + b_hh).reshape(1, 4 * H)
        blk = jnp.concatenate(
            [_permute_gate_cols(wih, H),
             _permute_gate_cols(whh, H),
             _permute_gate_cols(b, H)], axis=0)
        pad = rows - blk.shape[0]
        if pad:
            blk = jnp.concatenate(
                [blk, jnp.zeros((pad, 4 * H), jnp.float32)], axis=0)
        packed.append(blk)
    return jnp.stack(packed, axis=0)  # (L, rows, 4H)


def pack_fc(fc_params, fc_pad):
    ws, bs = [], []
    for (w, b) in fc_params:
        din, dout = w.shape
        wp = jnp.zeros((fc_pad, fc_pad), jnp.float32).at[:din, :dout].set(w)
        bp = jnp.zeros((1, fc_pad), jnp.float32).at[:, :dout].set(
            b.reshape(1, -1))
        ws.append(wp)
        bs.append(bp)
    return jnp.stack(ws, axis=0), jnp.stack(bs, axis=0)  # (n,P,P), (n,1,P)


# ----------------------------------------------------------------------------
# Wrapper
# ----------------------------------------------------------------------------
def fantasy_football_forward(x, lstm_params, fc_params, hidden_dim):
    B, T, D = x.shape
    H = hidden_dim
    num_layers = len(lstm_params)
    n_fc = len(fc_params)
    fc_pad = ((max(H, 128) + 127) // 128) * 128
    b_pad = ((B + 7) // 8) * 8

    lstm_w = pack_lstm(lstm_params, D, H)
    fcw, fcb = pack_fc(fc_params, fc_pad)

    # Time-major + batch padding (tiny, off the hot path).
    x_tm = jnp.transpose(x, (1, 0, 2)).astype(jnp.float32)   # (T, B, D)
    if b_pad != B:
        x_tm = jnp.concatenate(
            [x_tm, jnp.zeros((T, b_pad - B, D), jnp.float32)], axis=1)

    vmem = pl.BlockSpec(memory_space=pltpu.MemorySpace.VMEM)
    kernel = make_kernel(num_layers, T, b_pad, D, H, n_fc, fc_pad)
    out = pl.pallas_call(
        kernel,
        out_shape=jax.ShapeDtypeStruct((b_pad, fc_pad), jnp.float32),
        in_specs=[vmem, vmem, vmem, vmem],
        out_specs=vmem,
    )(x_tm, lstm_w, fcw, fcb)
    return out[:B, :1]


# ----------------------------------------------------------------------------
# Init + pure-JAX reference (PyTorch-equivalent math, unpermuted params)
# ----------------------------------------------------------------------------
def init_params(key, input_dim, hidden_dim, num_layers):
    """PyTorch-style init (uniform +-1/sqrt(fan)); gate order [i, f, g, o]."""
    H = hidden_dim
    k_lstm = 1.0 / jnp.sqrt(H)
    lstm_params = []
    for l in range(num_layers):
        in_dim = input_dim if l == 0 else H
        key, k1, k2, k3, k4 = jax.random.split(key, 5)
        wih = jax.random.uniform(k1, (in_dim, 4 * H), jnp.float32, -k_lstm, k_lstm)
        whh = jax.random.uniform(k2, (H, 4 * H), jnp.float32, -k_lstm, k_lstm)
        b_ih = jax.random.uniform(k3, (4 * H,), jnp.float32, -k_lstm, k_lstm)
        b_hh = jax.random.uniform(k4, (4 * H,), jnp.float32, -k_lstm, k_lstm)
        lstm_params.append((wih, whh, b_ih, b_hh))
    fc_params = []
    for (din, dout) in [(H, 128), (128, 64), (64, 32), (32, 1)]:
        key, k1, k2 = jax.random.split(key, 3)
        kf = 1.0 / jnp.sqrt(din)
        w = jax.random.uniform(k1, (din, dout), jnp.float32, -kf, kf)
        b = jax.random.uniform(k2, (dout,), jnp.float32, -kf, kf)
        fc_params.append((w, b))
    return lstm_params, fc_params


def reference_forward(x, lstm_params, fc_params, hidden_dim):
    H = hidden_dim
    B, T, D = x.shape
    num_layers = len(lstm_params)
    h = [jnp.zeros((B, H), jnp.float32) for _ in range(num_layers)]
    c = [jnp.zeros((B, H), jnp.float32) for _ in range(num_layers)]
    for t in range(T):
        inp = x[:, t, :]
        for l in range(num_layers):
            wih, whh, b_ih, b_hh = lstm_params[l]
            gates = inp @ wih + h[l] @ whh + (b_ih + b_hh)
            i = jax.nn.sigmoid(gates[:, 0 * H:1 * H])
            f = jax.nn.sigmoid(gates[:, 1 * H:2 * H])
            g = jnp.tanh(gates[:, 2 * H:3 * H])
            o = jax.nn.sigmoid(gates[:, 3 * H:4 * H])
            c[l] = f * c[l] + i * g
            h[l] = o * jnp.tanh(c[l])
            inp = h[l]
    out = h[-1]
    n_fc = len(fc_params)
    for i, (w, b) in enumerate(fc_params):
        out = out @ w + b
        if i < n_fc - 1:
            out = jnp.maximum(out, 0.0)
    return out


# ----------------------------------------------------------------------------
if __name__ == "__main__":
    BATCH, SEQ, INPUT_DIM, HIDDEN_DIM, NUM_LAYERS = 2, 8, 16, 32, 2

    key = jax.random.PRNGKey(0)
    key, kx = jax.random.split(key)
    x = jax.random.normal(kx, (BATCH, SEQ, INPUT_DIM), jnp.float32)
    lstm_params, fc_params = init_params(key, INPUT_DIM, HIDDEN_DIM, NUM_LAYERS)

    out = fantasy_football_forward(x, lstm_params, fc_params, HIDDEN_DIM)
    out = jax.block_until_ready(out)

    ref = reference_forward(x, lstm_params, fc_params, HIDDEN_DIM)
    assert out.shape == (BATCH, 1)
    assert jnp.allclose(out, ref, atol=2e-5, rtol=2e-5), (
        float(jnp.max(jnp.abs(out - ref))))

    print("KERNEL_OK")
</pallas_src>

<mosaic_0001>
module attributes {stable_mosaic.version = 11 : i64} {
  func.func @kernel(%arg0: memref<8x8x16xf32, #tpu.memory_space<vmem>>, %arg1: memref<2x72x128xf32, #tpu.memory_space<vmem>>, %arg2: memref<4x128x128xf32, #tpu.memory_space<vmem>>, %arg3: memref<4x1x128xf32, #tpu.memory_space<vmem>>, %arg4: memref<8x128xf32, #tpu.memory_space<vmem>>) attributes {dimension_semantics = [], scalar_prefetch = 0 : i64, scratch_operands = 0 : i64, tpu.core_type = #tpu.core_type<tc>} {
    %c0 = arith.constant 0 : index
    %c0_0 = arith.constant 0 : index
    %c0_1 = arith.constant 0 : index
    %0 = vector.load %arg0[%c0, %c0_0, %c0_1] : memref<8x8x16xf32, #tpu.memory_space<vmem>>, vector<8x8x16xf32>
    %1 = vector.shape_cast %0 : vector<8x8x16xf32> to vector<64x16xf32>
    %c0_2 = arith.constant 0 : index
    %c0_3 = arith.constant 0 : index
    %c0_4 = arith.constant 0 : index
    %2 = vector.load %arg1[%c0_2, %c0_3, %c0_4] : memref<2x72x128xf32, #tpu.memory_space<vmem>>, vector<1x72x128xf32>
    %3 = vector.shape_cast %2 : vector<1x72x128xf32> to vector<72x128xf32>
    %4 = vector.extract_strided_slice %3 {offsets = [0, 0], sizes = [16, 128], strides = [1, 1]} : vector<72x128xf32> to vector<16x128xf32>
    %5 = vector.extract_strided_slice %3 {offsets = [16, 0], sizes = [32, 128], strides = [1, 1]} : vector<72x128xf32> to vector<32x128xf32>
    %6 = vector.extract_strided_slice %3 {offsets = [48, 0], sizes = [1, 128], strides = [1, 1]} : vector<72x128xf32> to vector<1x128xf32>
    %cst = arith.constant dense<0.000000e+00> : vector<64x128xf32>
    %7 = tpu.matmul %1, %4, %cst {dimension_numbers = #tpu.dot_dimension_numbers<[1], [0], [0], [1], [0, 0, 1, 1], [], []>} : vector<64x16xf32>, vector<16x128xf32>, vector<64x128xf32> -> vector<64x128xf32>
    %8 = vector.broadcast %6 : vector<1x128xf32> to vector<64x128xf32>
    %9 = arith.addf %7, %8 : vector<64x128xf32>
    %cst_5 = arith.constant 0.000000e+00 : f32
    %10 = vector.broadcast %cst_5 : f32 to vector<8x32xf32>
    %cst_6 = arith.constant 0.000000e+00 : f32
    %11 = vector.broadcast %cst_6 : f32 to vector<8x32xf32>
    %12 = vector.extract_strided_slice %9 {offsets = [0, 0], sizes = [8, 128], strides = [1, 1]} : vector<64x128xf32> to vector<8x128xf32>
    %cst_7 = arith.constant dense<0.000000e+00> : vector<8x128xf32>
    %13 = tpu.matmul %10, %5, %cst_7 {dimension_numbers = #tpu.dot_dimension_numbers<[1], [0], [0], [1], [0, 0, 1, 1], [], []>} : vector<8x32xf32>, vector<32x128xf32>, vector<8x128xf32> -> vector<8x128xf32>
    %14 = arith.addf %12, %13 : vector<8x128xf32>
    %15 = arith.negf %14 : vector<8x128xf32>
    %16 = math.exp %15 : vector<8x128xf32>
    %cst_8 = arith.constant 1.000000e+00 : f32
    %17 = vector.broadcast %cst_8 : f32 to vector<8x128xf32>
    %18 = arith.addf %17, %16 : vector<8x128xf32>
    %19 = arith.divf %17, %18 : vector<8x128xf32>
    %20 = vector.extract_strided_slice %19 {offsets = [0, 0], sizes = [8, 32], strides = [1, 1]} : vector<8x128xf32> to vector<8x32xf32>
    %21 = vector.extract_strided_slice %19 {offsets = [0, 32], sizes = [8, 32], strides = [1, 1]} : vector<8x128xf32> to vector<8x32xf32>
    %22 = vector.extract_strided_slice %19 {offsets = [0, 64], sizes = [8, 32], strides = [1, 1]} : vector<8x128xf32> to vector<8x32xf32>
    %23 = vector.extract_strided_slice %19 {offsets = [0, 96], sizes = [8, 32], strides = [1, 1]} : vector<8x128xf32> to vector<8x32xf32>
    %cst_9 = arith.constant 2.000000e+00 : f32
    %24 = vector.broadcast %cst_9 : f32 to vector<8x32xf32>
    %25 = arith.mulf %24, %23 : vector<8x32xf32>
    %cst_10 = arith.constant 1.000000e+00 : f32
    %26 = vector.broadcast %cst_10 : f32 to vector<8x32xf32>
    %27 = arith.subf %25, %26 : vector<8x32xf32>
    %28 = arith.mulf %21, %11 : vector<8x32xf32>
    %29 = arith.mulf %20, %27 : vector<8x32xf32>
    %30 = arith.addf %28, %29 : vector<8x32xf32>
    %31 = math.tanh %30 : vector<8x32xf32>
    %32 = arith.mulf %22, %31 : vector<8x32xf32>
    %33 = vector.extract_strided_slice %9 {offsets = [8, 0], sizes = [8, 128], strides = [1, 1]} : vector<64x128xf32> to vector<8x128xf32>
    %cst_11 = arith.constant dense<0.000000e+00> : vector<8x128xf32>
    %34 = tpu.matmul %32, %5, %cst_11 {dimension_numbers = #tpu.dot_dimension_numbers<[1], [0], [0], [1], [0, 0, 1, 1], [], []>} : vector<8x32xf32>, vector<32x128xf32>, vector<8x128xf32> -> vector<8x128xf32>
    %35 = arith.addf %33, %34 : vector<8x128xf32>
    %36 = arith.negf %35 : vector<8x128xf32>
    %37 = math.exp %36 : vector<8x128xf32>
    %cst_12 = arith.constant 1.000000e+00 : f32
    %38 = vector.broadcast %cst_12 : f32 to vector<8x128xf32>
    %39 = arith.addf %38, %37 : vector<8x128xf32>
    %40 = arith.divf %38, %39 : vector<8x128xf32>
    %41 = vector.extract_strided_slice %40 {offsets = [0, 0], sizes = [8, 32], strides = [1, 1]} : vector<8x128xf32> to vector<8x32xf32>
    %42 = vector.extract_strided_slice %40 {offsets = [0, 32], sizes = [8, 32], strides = [1, 1]} : vector<8x128xf32> to vector<8x32xf32>
    %43 = vector.extract_strided_slice %40 {offsets = [0, 64], sizes = [8, 32], strides = [1, 1]} : vector<8x128xf32> to vector<8x32xf32>
    %44 = vector.extract_strided_slice %40 {offsets = [0, 96], sizes = [8, 32], strides = [1, 1]} : vector<8x128xf32> to vector<8x32xf32>
    %cst_13 = arith.constant 2.000000e+00 : f32
    %45 = vector.broadcast %cst_13 : f32 to vector<8x32xf32>
    %46 = arith.mulf %45, %44 : vector<8x32xf32>
    %cst_14 = arith.constant 1.000000e+00 : f32
    %47 = vector.broadcast %cst_14 : f32 to vector<8x32xf32>
    %48 = arith.subf %46, %47 : vector<8x32xf32>
    %49 = arith.mulf %42, %30 : vector<8x32xf32>
    %50 = arith.mulf %41, %48 : vector<8x32xf32>
    %51 = arith.addf %49, %50 : vector<8x32xf32>
    %52 = math.tanh %51 : vector<8x32xf32>
    %53 = arith.mulf %43, %52 : vector<8x32xf32>
    %54 = vector.extract_strided_slice %9 {offsets = [16, 0], sizes = [8, 128], strides = [1, 1]} : vector<64x128xf32> to vector<8x128xf32>
    %cst_15 = arith.constant dense<0.000000e+00> : vector<8x128xf32>
    %55 = tpu.matmul %53, %5, %cst_15 {dimension_numbers = #tpu.dot_dimension_numbers<[1], [0], [0], [1], [0, 0, 1, 1], [], []>} : vector<8x32xf32>, vector<32x128xf32>, vector<8x128xf32> -> vector<8x128xf32>
    %56 = arith.addf %54, %55 : vector<8x128xf32>
    %57 = arith.negf %56 : vector<8x128xf32>
    %58 = math.exp %57 : vector<8x128xf32>
    %cst_16 = arith.constant 1.000000e+00 : f32
    %59 = vector.broadcast %cst_16 : f32 to vector<8x128xf32>
    %60 = arith.addf %59, %58 : vector<8x128xf32>
    %61 = arith.divf %59, %60 : vector<8x128xf32>
    %62 = vector.extract_strided_slice %61 {offsets = [0, 0], sizes = [8, 32], strides = [1, 1]} : vector<8x128xf32> to vector<8x32xf32>
    %63 = vector.extract_strided_slice %61 {offsets = [0, 32], sizes = [8, 32], strides = [1, 1]} : vector<8x128xf32> to vector<8x32xf32>
    %64 = vector.extract_strided_slice %61 {offsets = [0, 64], sizes = [8, 32], strides = [1, 1]} : vector<8x128xf32> to vector<8x32xf32>
    %65 = vector.extract_strided_slice %61 {offsets = [0, 96], sizes = [8, 32], strides = [1, 1]} : vector<8x128xf32> to vector<8x32xf32>
    %cst_17 = arith.constant 2.000000e+00 : f32
    %66 = vector.broadcast %cst_17 : f32 to vector<8x32xf32>
    %67 = arith.mulf %66, %65 : vector<8x32xf32>
    %cst_18 = arith.constant 1.000000e+00 : f32
    %68 = vector.broadcast %cst_18 : f32 to vector<8x32xf32>
    %69 = arith.subf %67, %68 : vector<8x32xf32>
    %70 = arith.mulf %63, %51 : vector<8x32xf32>
    %71 = arith.mulf %62, %69 : vector<8x32xf32>
    %72 = arith.addf %70, %71 : vector<8x32xf32>
    %73 = math.tanh %72 : vector<8x32xf32>
    %74 = arith.mulf %64, %73 : vector<8x32xf32>
    %75 = vector.extract_strided_slice %9 {offsets = [24, 0], sizes = [8, 128], strides = [1, 1]} : vector<64x128xf32> to vector<8x128xf32>
    %cst_19 = arith.constant dense<0.000000e+00> : vector<8x128xf32>
    %76 = tpu.matmul %74, %5, %cst_19 {dimension_numbers = #tpu.dot_dimension_numbers<[1], [0], [0], [1], [0, 0, 1, 1], [], []>} : vector<8x32xf32>, vector<32x128xf32>, vector<8x128xf32> -> vector<8x128xf32>
    %77 = arith.addf %75, %76 : vector<8x128xf32>
    %78 = arith.negf %77 : vector<8x128xf32>
    %79 = math.exp %78 : vector<8x128xf32>
    %cst_20 = arith.constant 1.000000e+00 : f32
    %80 = vector.broadcast %cst_20 : f32 to vector<8x128xf32>
    %81 = arith.addf %80, %79 : vector<8x128xf32>
    %82 = arith.divf %80, %81 : vector<8x128xf32>
    %83 = vector.extract_strided_slice %82 {offsets = [0, 0], sizes = [8, 32], strides = [1, 1]} : vector<8x128xf32> to vector<8x32xf32>
    %84 = vector.extract_strided_slice %82 {offsets = [0, 32], sizes = [8, 32], strides = [1, 1]} : vector<8x128xf32> to vector<8x32xf32>
    %85 = vector.extract_strided_slice %82 {offsets = [0, 64], sizes = [8, 32], strides = [1, 1]} : vector<8x128xf32> to vector<8x32xf32>
    %86 = vector.extract_strided_slice %82 {offsets = [0, 96], sizes = [8, 32], strides = [1, 1]} : vector<8x128xf32> to vector<8x32xf32>
    %cst_21 = arith.constant 2.000000e+00 : f32
    %87 = vector.broadcast %cst_21 : f32 to vector<8x32xf32>
    %88 = arith.mulf %87, %86 : vector<8x32xf32>
    %cst_22 = arith.constant 1.000000e+00 : f32
    %89 = vector.broadcast %cst_22 : f32 to vector<8x32xf32>
    %90 = arith.subf %88, %89 : vector<8x32xf32>
    %91 = arith.mulf %84, %72 : vector<8x32xf32>
    %92 = arith.mulf %83, %90 : vector<8x32xf32>
    %93 = arith.addf %91, %92 : vector<8x32xf32>
    %94 = math.tanh %93 : vector<8x32xf32>
    %95 = arith.mulf %85, %94 : vector<8x32xf32>
    %96 = vector.extract_strided_slice %9 {offsets = [32, 0], sizes = [8, 128], strides = [1, 1]} : vector<64x128xf32> to vector<8x128xf32>
    %cst_23 = arith.constant dense<0.000000e+00> : vector<8x128xf32>
    %97 = tpu.matmul %95, %5, %cst_23 {dimension_numbers = #tpu.dot_dimension_numbers<[1], [0], [0], [1], [0, 0, 1, 1], [], []>} : vector<8x32xf32>, vector<32x128xf32>, vector<8x128xf32> -> vector<8x128xf32>
    %98 = arith.addf %96, %97 : vector<8x128xf32>
    %99 = arith.negf %98 : vector<8x128xf32>
    %100 = math.exp %99 : vector<8x128xf32>
    %cst_24 = arith.constant 1.000000e+00 : f32
    %101 = vector.broadcast %cst_24 : f32 to vector<8x128xf32>
    %102 = arith.addf %101, %100 : vector<8x128xf32>
    %103 = arith.divf %101, %102 : vector<8x128xf32>
    %104 = vector.extract_strided_slice %103 {offsets = [0, 0], sizes = [8, 32], strides = [1, 1]} : vector<8x128xf32> to vector<8x32xf32>
    %105 = vector.extract_strided_slice %103 {offsets = [0, 32], sizes = [8, 32], strides = [1, 1]} : vector<8x128xf32> to vector<8x32xf32>
    %106 = vector.extract_strided_slice %103 {offsets = [0, 64], sizes = [8, 32], strides = [1, 1]} : vector<8x128xf32> to vector<8x32xf32>
    %107 = vector.extract_strided_slice %103 {offsets = [0, 96], sizes = [8, 32], strides = [1, 1]} : vector<8x128xf32> to vector<8x32xf32>
    %cst_25 = arith.constant 2.000000e+00 : f32
    %108 = vector.broadcast %cst_25 : f32 to vector<8x32xf32>
    %109 = arith.mulf %108, %107 : vector<8x32xf32>
    %cst_26 = arith.constant 1.000000e+00 : f32
    %110 = vector.broadcast %cst_26 : f32 to vector<8x32xf32>
    %111 = arith.subf %109, %110 : vector<8x32xf32>
    %112 = arith.mulf %105, %93 : vector<8x32xf32>
    %113 = arith.mulf %104, %111 : vector<8x32xf32>
    %114 = arith.addf %112, %113 : vector<8x32xf32>
    %115 = math.tanh %114 : vector<8x32xf32>
    %116 = arith.mulf %106, %115 : vector<8x32xf32>
    %117 = vector.extract_strided_slice %9 {offsets = [40, 0], sizes = [8, 128], strides = [1, 1]} : vector<64x128xf32> to vector<8x128xf32>
    %cst_27 = arith.constant dense<0.000000e+00> : vector<8x128xf32>
    %118 = tpu.matmul %116, %5, %cst_27 {dimension_numbers = #tpu.dot_dimension_numbers<[1], [0], [0], [1], [0, 0, 1, 1], [], []>} : vector<8x32xf32>, vector<32x128xf32>, vector<8x128xf32> -> vector<8x128xf32>
    %119 = arith.addf %117, %118 : vector<8x128xf32>
    %120 = arith.negf %119 : vector<8x128xf32>
    %121 = math.exp %120 : vector<8x128xf32>
    %cst_28 = arith.constant 1.000000e+00 : f32
    %122 = vector.broadcast %cst_28 : f32 to vector<8x128xf32>
    %123 = arith.addf %122, %121 : vector<8x128xf32>
    %124 = arith.divf %122, %123 : vector<8x128xf32>
    %125 = vector.extract_strided_slice %124 {offsets = [0, 0], sizes = [8, 32], strides = [1, 1]} : vector<8x128xf32> to vector<8x32xf32>
    %126 = vector.extract_strided_slice %124 {offsets = [0, 32], sizes = [8, 32], strides = [1, 1]} : vector<8x128xf32> to vector<8x32xf32>
    %127 = vector.extract_strided_slice %124 {offsets = [0, 64], sizes = [8, 32], strides = [1, 1]} : vector<8x128xf32> to vector<8x32xf32>
    %128 = vector.extract_strided_slice %124 {offsets = [0, 96], sizes = [8, 32], strides = [1, 1]} : vector<8x128xf32> to vector<8x32xf32>
    %cst_29 = arith.constant 2.000000e+00 : f32
    %129 = vector.broadcast %cst_29 : f32 to vector<8x32xf32>
    %130 = arith.mulf %129, %128 : vector<8x32xf32>
    %cst_30 = arith.constant 1.000000e+00 : f32
    %131 = vector.broadcast %cst_30 : f32 to vector<8x32xf32>
    %132 = arith.subf %130, %131 : vector<8x32xf32>
    %133 = arith.mulf %126, %114 : vector<8x32xf32>
    %134 = arith.mulf %125, %132 : vector<8x32xf32>
    %135 = arith.addf %133, %134 : vector<8x32xf32>
    %136 = math.tanh %135 : vector<8x32xf32>
    %137 = arith.mulf %127, %136 : vector<8x32xf32>
    %138 = vector.extract_strided_slice %9 {offsets = [48, 0], sizes = [8, 128], strides = [1, 1]} : vector<64x128xf32> to vector<8x128xf32>
    %cst_31 = arith.constant dense<0.000000e+00> : vector<8x128xf32>
    %139 = tpu.matmul %137, %5, %cst_31 {dimension_numbers = #tpu.dot_dimension_numbers<[1], [0], [0], [1], [0, 0, 1, 1], [], []>} : vector<8x32xf32>, vector<32x128xf32>, vector<8x128xf32> -> vector<8x128xf32>
    %140 = arith.addf %138, %139 : vector<8x128xf32>
    %141 = arith.negf %140 : vector<8x128xf32>
    %142 = math.exp %141 : vector<8x128xf32>
    %cst_32 = arith.constant 1.000000e+00 : f32
    %143 = vector.broadcast %cst_32 : f32 to vector<8x128xf32>
    %144 = arith.addf %143, %142 : vector<8x128xf32>
    %145 = arith.divf %143, %144 : vector<8x128xf32>
    %146 = vector.extract_strided_slice %145 {offsets = [0, 0], sizes = [8, 32], strides = [1, 1]} : vector<8x128xf32> to vector<8x32xf32>
    %147 = vector.extract_strided_slice %145 {offsets = [0, 32], sizes = [8, 32], strides = [1, 1]} : vector<8x128xf32> to vector<8x32xf32>
    %148 = vector.extract_strided_slice %145 {offsets = [0, 64], sizes = [8, 32], strides = [1, 1]} : vector<8x128xf32> to vector<8x32xf32>
    %149 = vector.extract_strided_slice %145 {offsets = [0, 96], sizes = [8, 32], strides = [1, 1]} : vector<8x128xf32> to vector<8x32xf32>
    %cst_33 = arith.constant 2.000000e+00 : f32
    %150 = vector.broadcast %cst_33 : f32 to vector<8x32xf32>
    %151 = arith.mulf %150, %149 : vector<8x32xf32>
    %cst_34 = arith.constant 1.000000e+00 : f32
    %152 = vector.broadcast %cst_34 : f32 to vector<8x32xf32>
    %153 = arith.subf %151, %152 : vector<8x32xf32>
    %154 = arith.mulf %147, %135 : vector<8x32xf32>
    %155 = arith.mulf %146, %153 : vector<8x32xf32>
    %156 = arith.addf %154, %155 : vector<8x32xf32>
    %157 = math.tanh %156 : vector<8x32xf32>
    %158 = arith.mulf %148, %157 : vector<8x32xf32>
    %159 = vector.extract_strided_slice %9 {offsets = [56, 0], sizes = [8, 128], strides = [1, 1]} : vector<64x128xf32> to vector<8x128xf32>
    %cst_35 = arith.constant dense<0.000000e+00> : vector<8x128xf32>
    %160 = tpu.matmul %158, %5, %cst_35 {dimension_numbers = #tpu.dot_dimension_numbers<[1], [0], [0], [1], [0, 0, 1, 1], [], []>} : vector<8x32xf32>, vector<32x128xf32>, vector<8x128xf32> -> vector<8x128xf32>
    %161 = arith.addf %159, %160 : vector<8x128xf32>
    %162 = arith.negf %161 : vector<8x128xf32>
    %163 = math.exp %162 : vector<8x128xf32>
    %cst_36 = arith.constant 1.000000e+00 : f32
    %164 = vector.broadcast %cst_36 : f32 to vector<8x128xf32>
    %165 = arith.addf %164, %163 : vector<8x128xf32>
    %166 = arith.divf %164, %165 : vector<8x128xf32>
    %167 = vector.extract_strided_slice %166 {offsets = [0, 0], sizes = [8, 32], strides = [1, 1]} : vector<8x128xf32> to vector<8x32xf32>
    %168 = vector.extract_strided_slice %166 {offsets = [0, 32], sizes = [8, 32], strides = [1, 1]} : vector<8x128xf32> to vector<8x32xf32>
    %169 = vector.extract_strided_slice %166 {offsets = [0, 64], sizes = [8, 32], strides = [1, 1]} : vector<8x128xf32> to vector<8x32xf32>
    %170 = vector.extract_strided_slice %166 {offsets = [0, 96], sizes = [8, 32], strides = [1, 1]} : vector<8x128xf32> to vector<8x32xf32>
    %cst_37 = arith.constant 2.000000e+00 : f32
    %171 = vector.broadcast %cst_37 : f32 to vector<8x32xf32>
    %172 = arith.mulf %171, %170 : vector<8x32xf32>
    %cst_38 = arith.constant 1.000000e+00 : f32
    %173 = vector.broadcast %cst_38 : f32 to vector<8x32xf32>
    %174 = arith.subf %172, %173 : vector<8x32xf32>
    %175 = arith.mulf %168, %156 : vector<8x32xf32>
    %176 = arith.mulf %167, %174 : vector<8x32xf32>
    %177 = arith.addf %175, %176 : vector<8x32xf32>
    %178 = math.tanh %177 : vector<8x32xf32>
    %179 = arith.mulf %169, %178 : vector<8x32xf32>
    %180 = tpu.concatenate %32, %53, %74, %95, %116, %137, %158, %179 in 0 : vector<8x32xf32>, vector<8x32xf32>, vector<8x32xf32>, vector<8x32xf32>, vector<8x32xf32>, vector<8x32xf32>, vector<8x32xf32>, vector<8x32xf32> -> vector<64x32xf32>
    %c1 = arith.constant 1 : index
    %c0_39 = arith.constant 0 : index
    %c0_40 = arith.constant 0 : index
    %181 = vector.load %arg1[%c1, %c0_39, %c0_40] : memref<2x72x128xf32, #tpu.memory_space<vmem>>, vector<1x72x128xf32>
    %182 = vector.shape_cast %181 : vector<1x72x128xf32> to vector<72x128xf32>
    %183 = vector.extract_strided_slice %182 {offsets = [0, 0], sizes = [32, 128], strides = [1, 1]} : vector<72x128xf32> to vector<32x128xf32>
    %184 = vector.extract_strided_slice %182 {offsets = [32, 0], sizes = [32, 128], strides = [1, 1]} : vector<72x128xf32> to vector<32x128xf32>
    %185 = vector.extract_strided_slice %182 {offsets = [64, 0], sizes = [1, 128], strides = [1, 1]} : vector<72x128xf32> to vector<1x128xf32>
    %cst_41 = arith.constant dense<0.000000e+00> : vector<64x128xf32>
    %186 = tpu.matmul %180, %183, %cst_41 {dimension_numbers = #tpu.dot_dimension_numbers<[1], [0], [0], [1], [0, 0, 1, 1], [], []>} : vector<64x32xf32>, vector<32x128xf32>, vector<64x128xf32> -> vector<64x128xf32>
    %187 = vector.broadcast %185 : vector<1x128xf32> to vector<64x128xf32>
    %188 = arith.addf %186, %187 : vector<64x128xf32>
    %cst_42 = arith.constant 0.000000e+00 : f32
    %189 = vector.broadcast %cst_42 : f32 to vector<8x32xf32>
    %cst_43 = arith.constant 0.000000e+00 : f32
    %190 = vector.broadcast %cst_43 : f32 to vector<8x32xf32>
    %191 = vector.extract_strided_slice %188 {offsets = [0, 0], sizes = [8, 128], strides = [1, 1]} : vector<64x128xf32> to vector<8x128xf32>
    %cst_44 = arith.constant dense<0.000000e+00> : vector<8x128xf32>
    %192 = tpu.matmul %189, %184, %cst_44 {dimension_numbers = #tpu.dot_dimension_numbers<[1], [0], [0], [1], [0, 0, 1, 1], [], []>} : vector<8x32xf32>, vector<32x128xf32>, vector<8x128xf32> -> vector<8x128xf32>
    %193 = arith.addf %191, %192 : vector<8x128xf32>
    %194 = arith.negf %193 : vector<8x128xf32>
    %195 = math.exp %194 : vector<8x128xf32>
    %cst_45 = arith.constant 1.000000e+00 : f32
    %196 = vector.broadcast %cst_45 : f32 to vector<8x128xf32>
    %197 = arith.addf %196, %195 : vector<8x128xf32>
    %198 = arith.divf %196, %197 : vector<8x128xf32>
    %199 = vector.extract_strided_slice %198 {offsets = [0, 0], sizes = [8, 32], strides = [1, 1]} : vector<8x128xf32> to vector<8x32xf32>
    %200 = vector.extract_strided_slice %198 {offsets = [0, 32], sizes = [8, 32], strides = [1, 1]} : vector<8x128xf32> to vector<8x32xf32>
    %201 = vector.extract_strided_slice %198 {offsets = [0, 64], sizes = [8, 32], strides = [1, 1]} : vector<8x128xf32> to vector<8x32xf32>
    %202 = vector.extract_strided_slice %198 {offsets = [0, 96], sizes = [8, 32], strides = [1, 1]} : vector<8x128xf32> to vector<8x32xf32>
    %cst_46 = arith.constant 2.000000e+00 : f32
    %203 = vector.broadcast %cst_46 : f32 to vector<8x32xf32>
    %204 = arith.mulf %203, %202 : vector<8x32xf32>
    %cst_47 = arith.constant 1.000000e+00 : f32
    %205 = vector.broadcast %cst_47 : f32 to vector<8x32xf32>
    %206 = arith.subf %204, %205 : vector<8x32xf32>
    %207 = arith.mulf %200, %190 : vector<8x32xf32>
    %208 = arith.mulf %199, %206 : vector<8x32xf32>
    %209 = arith.addf %207, %208 : vector<8x32xf32>
    %210 = math.tanh %209 : vector<8x32xf32>
    %211 = arith.mulf %201, %210 : vector<8x32xf32>
    %212 = vector.extract_strided_slice %188 {offsets = [8, 0], sizes = [8, 128], strides = [1, 1]} : vector<64x128xf32> to vector<8x128xf32>
    %cst_48 = arith.constant dense<0.000000e+00> : vector<8x128xf32>
    %213 = tpu.matmul %211, %184, %cst_48 {dimension_numbers = #tpu.dot_dimension_numbers<[1], [0], [0], [1], [0, 0, 1, 1], [], []>} : vector<8x32xf32>, vector<32x128xf32>, vector<8x128xf32> -> vector<8x128xf32>
    %214 = arith.addf %212, %213 : vector<8x128xf32>
    %215 = arith.negf %214 : vector<8x128xf32>
    %216 = math.exp %215 : vector<8x128xf32>
    %cst_49 = arith.constant 1.000000e+00 : f32
    %217 = vector.broadcast %cst_49 : f32 to vector<8x128xf32>
    %218 = arith.addf %217, %216 : vector<8x128xf32>
    %219 = arith.divf %217, %218 : vector<8x128xf32>
    %220 = vector.extract_strided_slice %219 {offsets = [0, 0], sizes = [8, 32], strides = [1, 1]} : vector<8x128xf32> to vector<8x32xf32>
    %221 = vector.extract_strided_slice %219 {offsets = [0, 32], sizes = [8, 32], strides = [1, 1]} : vector<8x128xf32> to vector<8x32xf32>
    %222 = vector.extract_strided_slice %219 {offsets = [0, 64], sizes = [8, 32], strides = [1, 1]} : vector<8x128xf32> to vector<8x32xf32>
    %223 = vector.extract_strided_slice %219 {offsets = [0, 96], sizes = [8, 32], strides = [1, 1]} : vector<8x128xf32> to vector<8x32xf32>
    %cst_50 = arith.constant 2.000000e+00 : f32
    %224 = vector.broadcast %cst_50 : f32 to vector<8x32xf32>
    %225 = arith.mulf %224, %223 : vector<8x32xf32>
    %cst_51 = arith.constant 1.000000e+00 : f32
    %226 = vector.broadcast %cst_51 : f32 to vector<8x32xf32>
    %227 = arith.subf %225, %226 : vector<8x32xf32>
    %228 = arith.mulf %221, %209 : vector<8x32xf32>
    %229 = arith.mulf %220, %227 : vector<8x32xf32>
    %230 = arith.addf %228, %229 : vector<8x32xf32>
    %231 = math.tanh %230 : vector<8x32xf32>
    %232 = arith.mulf %222, %231 : vector<8x32xf32>
    %233 = vector.extract_strided_slice %188 {offsets = [16, 0], sizes = [8, 128], strides = [1, 1]} : vector<64x128xf32> to vector<8x128xf32>
    %cst_52 = arith.constant dense<0.000000e+00> : vector<8x128xf32>
    %234 = tpu.matmul %232, %184, %cst_52 {dimension_numbers = #tpu.dot_dimension_numbers<[1], [0], [0], [1], [0, 0, 1, 1], [], []>} : vector<8x32xf32>, vector<32x128xf32>, vector<8x128xf32> -> vector<8x128xf32>
    %235 = arith.addf %233, %234 : vector<8x128xf32>
    %236 = arith.negf %235 : vector<8x128xf32>
    %237 = math.exp %236 : vector<8x128xf32>
    %cst_53 = arith.constant 1.000000e+00 : f32
    %238 = vector.broadcast %cst_53 : f32 to vector<8x128xf32>
    %239 = arith.addf %238, %237 : vector<8x128xf32>
    %240 = arith.divf %238, %239 : vector<8x128xf32>
    %241 = vector.extract_strided_slice %240 {offsets = [0, 0], sizes = [8, 32], strides = [1, 1]} : vector<8x128xf32> to vector<8x32xf32>
    %242 = vector.extract_strided_slice %240 {offsets = [0, 32], sizes = [8, 32], strides = [1, 1]} : vector<8x128xf32> to vector<8x32xf32>
    %243 = vector.extract_strided_slice %240 {offsets = [0, 64], sizes = [8, 32], strides = [1, 1]} : vector<8x128xf32> to vector<8x32xf32>
    %244 = vector.extract_strided_slice %240 {offsets = [0, 96], sizes = [8, 32], strides = [1, 1]} : vector<8x128xf32> to vector<8x32xf32>
    %cst_54 = arith.constant 2.000000e+00 : f32
    %245 = vector.broadcast %cst_54 : f32 to vector<8x32xf32>
    %246 = arith.mulf %245, %244 : vector<8x32xf32>
    %cst_55 = arith.constant 1.000000e+00 : f32
    %247 = vector.broadcast %cst_55 : f32 to vector<8x32xf32>
    %248 = arith.subf %246, %247 : vector<8x32xf32>
    %249 = arith.mulf %242, %230 : vector<8x32xf32>
    %250 = arith.mulf %241, %248 : vector<8x32xf32>
    %251 = arith.addf %249, %250 : vector<8x32xf32>
    %252 = math.tanh %251 : vector<8x32xf32>
    %253 = arith.mulf %243, %252 : vector<8x32xf32>
    %254 = vector.extract_strided_slice %188 {offsets = [24, 0], sizes = [8, 128], strides = [1, 1]} : vector<64x128xf32> to vector<8x128xf32>
    %cst_56 = arith.constant dense<0.000000e+00> : vector<8x128xf32>
    %255 = tpu.matmul %253, %184, %cst_56 {dimension_numbers = #tpu.dot_dimension_numbers<[1], [0], [0], [1], [0, 0, 1, 1], [], []>} : vector<8x32xf32>, vector<32x128xf32>, vector<8x128xf32> -> vector<8x128xf32>
    %256 = arith.addf %254, %255 : vector<8x128xf32>
    %257 = arith.negf %256 : vector<8x128xf32>
    %258 = math.exp %257 : vector<8x128xf32>
    %cst_57 = arith.constant 1.000000e+00 : f32
    %259 = vector.broadcast %cst_57 : f32 to vector<8x128xf32>
    %260 = arith.addf %259, %258 : vector<8x128xf32>
    %261 = arith.divf %259, %260 : vector<8x128xf32>
    %262 = vector.extract_strided_slice %261 {offsets = [0, 0], sizes = [8, 32], strides = [1, 1]} : vector<8x128xf32> to vector<8x32xf32>
    %263 = vector.extract_strided_slice %261 {offsets = [0, 32], sizes = [8, 32], strides = [1, 1]} : vector<8x128xf32> to vector<8x32xf32>
    %264 = vector.extract_strided_slice %261 {offsets = [0, 64], sizes = [8, 32], strides = [1, 1]} : vector<8x128xf32> to vector<8x32xf32>
    %265 = vector.extract_strided_slice %261 {offsets = [0, 96], sizes = [8, 32], strides = [1, 1]} : vector<8x128xf32> to vector<8x32xf32>
    %cst_58 = arith.constant 2.000000e+00 : f32
    %266 = vector.broadcast %cst_58 : f32 to vector<8x32xf32>
    %267 = arith.mulf %266, %265 : vector<8x32xf32>
    %cst_59 = arith.constant 1.000000e+00 : f32
    %268 = vector.broadcast %cst_59 : f32 to vector<8x32xf32>
    %269 = arith.subf %267, %268 : vector<8x32xf32>
    %270 = arith.mulf %263, %251 : vector<8x32xf32>
    %271 = arith.mulf %262, %269 : vector<8x32xf32>
    %272 = arith.addf %270, %271 : vector<8x32xf32>
    %273 = math.tanh %272 : vector<8x32xf32>
    %274 = arith.mulf %264, %273 : vector<8x32xf32>
    %275 = vector.extract_strided_slice %188 {offsets = [32, 0], sizes = [8, 128], strides = [1, 1]} : vector<64x128xf32> to vector<8x128xf32>
    %cst_60 = arith.constant dense<0.000000e+00> : vector<8x128xf32>
    %276 = tpu.matmul %274, %184, %cst_60 {dimension_numbers = #tpu.dot_dimension_numbers<[1], [0], [0], [1], [0, 0, 1, 1], [], []>} : vector<8x32xf32>, vector<32x128xf32>, vector<8x128xf32> -> vector<8x128xf32>
    %277 = arith.addf %275, %276 : vector<8x128xf32>
    %278 = arith.negf %277 : vector<8x128xf32>
    %279 = math.exp %278 : vector<8x128xf32>
    %cst_61 = arith.constant 1.000000e+00 : f32
    %280 = vector.broadcast %cst_61 : f32 to vector<8x128xf32>
    %281 = arith.addf %280, %279 : vector<8x128xf32>
    %282 = arith.divf %280, %281 : vector<8x128xf32>
    %283 = vector.extract_strided_slice %282 {offsets = [0, 0], sizes = [8, 32], strides = [1, 1]} : vector<8x128xf32> to vector<8x32xf32>
    %284 = vector.extract_strided_slice %282 {offsets = [0, 32], sizes = [8, 32], strides = [1, 1]} : vector<8x128xf32> to vector<8x32xf32>
    %285 = vector.extract_strided_slice %282 {offsets = [0, 64], sizes = [8, 32], strides = [1, 1]} : vector<8x128xf32> to vector<8x32xf32>
    %286 = vector.extract_strided_slice %282 {offsets = [0, 96], sizes = [8, 32], strides = [1, 1]} : vector<8x128xf32> to vector<8x32xf32>
    %cst_62 = arith.constant 2.000000e+00 : f32
    %287 = vector.broadcast %cst_62 : f32 to vector<8x32xf32>
    %288 = arith.mulf %287, %286 : vector<8x32xf32>
    %cst_63 = arith.constant 1.000000e+00 : f32
    %289 = vector.broadcast %cst_63 : f32 to vector<8x32xf32>
    %290 = arith.subf %288, %289 : vector<8x32xf32>
    %291 = arith.mulf %284, %272 : vector<8x32xf32>
    %292 = arith.mulf %283, %290 : vector<8x32xf32>
    %293 = arith.addf %291, %292 : vector<8x32xf32>
    %294 = math.tanh %293 : vector<8x32xf32>
    %295 = arith.mulf %285, %294 : vector<8x32xf32>
    %296 = vector.extract_strided_slice %188 {offsets = [40, 0], sizes = [8, 128], strides = [1, 1]} : vector<64x128xf32> to vector<8x128xf32>
    %cst_64 = arith.constant dense<0.000000e+00> : vector<8x128xf32>
    %297 = tpu.matmul %295, %184, %cst_64 {dimension_numbers = #tpu.dot_dimension_numbers<[1], [0], [0], [1], [0, 0, 1, 1], [], []>} : vector<8x32xf32>, vector<32x128xf32>, vector<8x128xf32> -> vector<8x128xf32>
    %298 = arith.addf %296, %297 : vector<8x128xf32>
    %299 = arith.negf %298 : vector<8x128xf32>
    %300 = math.exp %299 : vector<8x128xf32>
    %cst_65 = arith.constant 1.000000e+00 : f32
    %301 = vector.broadcast %cst_65 : f32 to vector<8x128xf32>
    %302 = arith.addf %301, %300 : vector<8x128xf32>
    %303 = arith.divf %301, %302 : vector<8x128xf32>
    %304 = vector.extract_strided_slice %303 {offsets = [0, 0], sizes = [8, 32], strides = [1, 1]} : vector<8x128xf32> to vector<8x32xf32>
    %305 = vector.extract_strided_slice %303 {offsets = [0, 32], sizes = [8, 32], strides = [1, 1]} : vector<8x128xf32> to vector<8x32xf32>
    %306 = vector.extract_strided_slice %303 {offsets = [0, 64], sizes = [8, 32], strides = [1, 1]} : vector<8x128xf32> to vector<8x32xf32>
    %307 = vector.extract_strided_slice %303 {offsets = [0, 96], sizes = [8, 32], strides = [1, 1]} : vector<8x128xf32> to vector<8x32xf32>
    %cst_66 = arith.constant 2.000000e+00 : f32
    %308 = vector.broadcast %cst_66 : f32 to vector<8x32xf32>
    %309 = arith.mulf %308, %307 : vector<8x32xf32>
    %cst_67 = arith.constant 1.000000e+00 : f32
    %310 = vector.broadcast %cst_67 : f32 to vector<8x32xf32>
    %311 = arith.subf %309, %310 : vector<8x32xf32>
    %312 = arith.mulf %305, %293 : vector<8x32xf32>
    %313 = arith.mulf %304, %311 : vector<8x32xf32>
    %314 = arith.addf %312, %313 : vector<8x32xf32>
    %315 = math.tanh %314 : vector<8x32xf32>
    %316 = arith.mulf %306, %315 : vector<8x32xf32>
    %317 = vector.extract_strided_slice %188 {offsets = [48, 0], sizes = [8, 128], strides = [1, 1]} : vector<64x128xf32> to vector<8x128xf32>
    %cst_68 = arith.constant dense<0.000000e+00> : vector<8x128xf32>
    %318 = tpu.matmul %316, %184, %cst_68 {dimension_numbers = #tpu.dot_dimension_numbers<[1], [0], [0], [1], [0, 0, 1, 1], [], []>} : vector<8x32xf32>, vector<32x128xf32>, vector<8x128xf32> -> vector<8x128xf32>
    %319 = arith.addf %317, %318 : vector<8x128xf32>
    %320 = arith.negf %319 : vector<8x128xf32>
    %321 = math.exp %320 : vector<8x128xf32>
    %cst_69 = arith.constant 1.000000e+00 : f32
    %322 = vector.broadcast %cst_69 : f32 to vector<8x128xf32>
    %323 = arith.addf %322, %321 : vector<8x128xf32>
    %324 = arith.divf %322, %323 : vector<8x128xf32>
    %325 = vector.extract_strided_slice %324 {offsets = [0, 0], sizes = [8, 32], strides = [1, 1]} : vector<8x128xf32> to vector<8x32xf32>
    %326 = vector.extract_strided_slice %324 {offsets = [0, 32], sizes = [8, 32], strides = [1, 1]} : vector<8x128xf32> to vector<8x32xf32>
    %327 = vector.extract_strided_slice %324 {offsets = [0, 64], sizes = [8, 32], strides = [1, 1]} : vector<8x128xf32> to vector<8x32xf32>
    %328 = vector.extract_strided_slice %324 {offsets = [0, 96], sizes = [8, 32], strides = [1, 1]} : vector<8x128xf32> to vector<8x32xf32>
    %cst_70 = arith.constant 2.000000e+00 : f32
    %329 = vector.broadcast %cst_70 : f32 to vector<8x32xf32>
    %330 = arith.mulf %329, %328 : vector<8x32xf32>
    %cst_71 = arith.constant 1.000000e+00 : f32
    %331 = vector.broadcast %cst_71 : f32 to vector<8x32xf32>
    %332 = arith.subf %330, %331 : vector<8x32xf32>
    %333 = arith.mulf %326, %314 : vector<8x32xf32>
    %334 = arith.mulf %325, %332 : vector<8x32xf32>
    %335 = arith.addf %333, %334 : vector<8x32xf32>
    %336 = math.tanh %335 : vector<8x32xf32>
    %337 = arith.mulf %327, %336 : vector<8x32xf32>
    %338 = vector.extract_strided_slice %188 {offsets = [56, 0], sizes = [8, 128], strides = [1, 1]} : vector<64x128xf32> to vector<8x128xf32>
    %cst_72 = arith.constant dense<0.000000e+00> : vector<8x128xf32>
    %339 = tpu.matmul %337, %184, %cst_72 {dimension_numbers = #tpu.dot_dimension_numbers<[1], [0], [0], [1], [0, 0, 1, 1], [], []>} : vector<8x32xf32>, vector<32x128xf32>, vector<8x128xf32> -> vector<8x128xf32>
    %340 = arith.addf %338, %339 : vector<8x128xf32>
    %341 = arith.negf %340 : vector<8x128xf32>
    %342 = math.exp %341 : vector<8x128xf32>
    %cst_73 = arith.constant 1.000000e+00 : f32
    %343 = vector.broadcast %cst_73 : f32 to vector<8x128xf32>
    %344 = arith.addf %343, %342 : vector<8x128xf32>
    %345 = arith.divf %343, %344 : vector<8x128xf32>
    %346 = vector.extract_strided_slice %345 {offsets = [0, 0], sizes = [8, 32], strides = [1, 1]} : vector<8x128xf32> to vector<8x32xf32>
    %347 = vector.extract_strided_slice %345 {offsets = [0, 32], sizes = [8, 32], strides = [1, 1]} : vector<8x128xf32> to vector<8x32xf32>
    %348 = vector.extract_strided_slice %345 {offsets = [0, 64], sizes = [8, 32], strides = [1, 1]} : vector<8x128xf32> to vector<8x32xf32>
    %349 = vector.extract_strided_slice %345 {offsets = [0, 96], sizes = [8, 32], strides = [1, 1]} : vector<8x128xf32> to vector<8x32xf32>
    %cst_74 = arith.constant 2.000000e+00 : f32
    %350 = vector.broadcast %cst_74 : f32 to vector<8x32xf32>
    %351 = arith.mulf %350, %349 : vector<8x32xf32>
    %cst_75 = arith.constant 1.000000e+00 : f32
    %352 = vector.broadcast %cst_75 : f32 to vector<8x32xf32>
    %353 = arith.subf %351, %352 : vector<8x32xf32>
    %354 = arith.mulf %347, %335 : vector<8x32xf32>
    %355 = arith.mulf %346, %353 : vector<8x32xf32>
    %356 = arith.addf %354, %355 : vector<8x32xf32>
    %357 = math.tanh %356 : vector<8x32xf32>
    %358 = arith.mulf %348, %357 : vector<8x32xf32>
    %cst_76 = arith.constant 0.000000e+00 : f32
    %359 = vector.broadcast %cst_76 : f32 to vector<8x96xf32>
    %360 = tpu.concatenate %358, %359 in 1 : vector<8x32xf32>, vector<8x96xf32> -> vector<8x128xf32>
    %c0_77 = arith.constant 0 : index
    %c0_78 = arith.constant 0 : index
    %c0_79 = arith.constant 0 : index
    %361 = vector.load %arg2[%c0_77, %c0_78, %c0_79] : memref<4x128x128xf32, #tpu.memory_space<vmem>>, vector<1x128x128xf32>
    %362 = vector.shape_cast %361 : vector<1x128x128xf32> to vector<128x128xf32>
    %cst_80 = arith.constant dense<0.000000e+00> : vector<8x128xf32>
    %363 = tpu.matmul %360, %362, %cst_80 {dimension_numbers = #tpu.dot_dimension_numbers<[1], [0], [0], [1], [0, 0, 1, 1], [], []>} : vector<8x128xf32>, vector<128x128xf32>, vector<8x128xf32> -> vector<8x128xf32>
    %c0_81 = arith.constant 0 : index
    %c0_82 = arith.constant 0 : index
    %c0_83 = arith.constant 0 : index
    %364 = vector.load %arg3[%c0_81, %c0_82, %c0_83] : memref<4x1x128xf32, #tpu.memory_space<vmem>>, vector<1x1x128xf32>
    %365 = vector.shape_cast %364 : vector<1x1x128xf32> to vector<1x128xf32>
    %366 = vector.broadcast %365 : vector<1x128xf32> to vector<8x128xf32>
    %367 = arith.addf %363, %366 : vector<8x128xf32>
    %cst_84 = arith.constant 0.000000e+00 : f32
    %368 = vector.broadcast %cst_84 : f32 to vector<8x128xf32>
    %369 = arith.maximumf %367, %368 : vector<8x128xf32>
    %c1_85 = arith.constant 1 : index
    %c0_86 = arith.constant 0 : index
    %c0_87 = arith.constant 0 : index
    %370 = vector.load %arg2[%c1_85, %c0_86, %c0_87] : memref<4x128x128xf32, #tpu.memory_space<vmem>>, vector<1x128x128xf32>
    %371 = vector.shape_cast %370 : vector<1x128x128xf32> to vector<128x128xf32>
    %cst_88 = arith.constant dense<0.000000e+00> : vector<8x128xf32>
    %372 = tpu.matmul %369, %371, %cst_88 {dimension_numbers = #tpu.dot_dimension_numbers<[1], [0], [0], [1], [0, 0, 1, 1], [], []>} : vector<8x128xf32>, vector<128x128xf32>, vector<8x128xf32> -> vector<8x128xf32>
    %c1_89 = arith.constant 1 : index
    %c0_90 = arith.constant 0 : index
    %c0_91 = arith.constant 0 : index
    %373 = vector.load %arg3[%c1_89, %c0_90, %c0_91] : memref<4x1x128xf32, #tpu.memory_space<vmem>>, vector<1x1x128xf32>
    %374 = vector.shape_cast %373 : vector<1x1x128xf32> to vector<1x128xf32>
    %375 = vector.broadcast %374 : vector<1x128xf32> to vector<8x128xf32>
    %376 = arith.addf %372, %375 : vector<8x128xf32>
    %cst_92 = arith.constant 0.000000e+00 : f32
    %377 = vector.broadcast %cst_92 : f32 to vector<8x128xf32>
    %378 = arith.maximumf %376, %377 : vector<8x128xf32>
    %c2 = arith.constant 2 : index
    %c0_93 = arith.constant 0 : index
    %c0_94 = arith.constant 0 : index
    %379 = vector.load %arg2[%c2, %c0_93, %c0_94] : memref<4x128x128xf32, #tpu.memory_space<vmem>>, vector<1x128x128xf32>
    %380 = vector.shape_cast %379 : vector<1x128x128xf32> to vector<128x128xf32>
    %cst_95 = arith.constant dense<0.000000e+00> : vector<8x128xf32>
    %381 = tpu.matmul %378, %380, %cst_95 {dimension_numbers = #tpu.dot_dimension_numbers<[1], [0], [0], [1], [0, 0, 1, 1], [], []>} : vector<8x128xf32>, vector<128x128xf32>, vector<8x128xf32> -> vector<8x128xf32>
    %c2_96 = arith.constant 2 : index
    %c0_97 = arith.constant 0 : index
    %c0_98 = arith.constant 0 : index
    %382 = vector.load %arg3[%c2_96, %c0_97, %c0_98] : memref<4x1x128xf32, #tpu.memory_space<vmem>>, vector<1x1x128xf32>
    %383 = vector.shape_cast %382 : vector<1x1x128xf32> to vector<1x128xf32>
    %384 = vector.broadcast %383 : vector<1x128xf32> to vector<8x128xf32>
    %385 = arith.addf %381, %384 : vector<8x128xf32>
    %cst_99 = arith.constant 0.000000e+00 : f32
    %386 = vector.broadcast %cst_99 : f32 to vector<8x128xf32>
    %387 = arith.maximumf %385, %386 : vector<8x128xf32>
    %c3 = arith.constant 3 : index
    %c0_100 = arith.constant 0 : index
    %c0_101 = arith.constant 0 : index
    %388 = vector.load %arg2[%c3, %c0_100, %c0_101] : memref<4x128x128xf32, #tpu.memory_space<vmem>>, vector<1x128x128xf32>
    %389 = vector.shape_cast %388 : vector<1x128x128xf32> to vector<128x128xf32>
    %cst_102 = arith.constant dense<0.000000e+00> : vector<8x128xf32>
    %390 = tpu.matmul %387, %389, %cst_102 {dimension_numbers = #tpu.dot_dimension_numbers<[1], [0], [0], [1], [0, 0, 1, 1], [], []>} : vector<8x128xf32>, vector<128x128xf32>, vector<8x128xf32> -> vector<8x128xf32>
    %c3_103 = arith.constant 3 : index
    %c0_104 = arith.constant 0 : index
    %c0_105 = arith.constant 0 : index
    %391 = vector.load %arg3[%c3_103, %c0_104, %c0_105] : memref<4x1x128xf32, #tpu.memory_space<vmem>>, vector<1x1x128xf32>
    %392 = vector.shape_cast %391 : vector<1x1x128xf32> to vector<1x128xf32>
    %393 = vector.broadcast %392 : vector<1x128xf32> to vector<8x128xf32>
    %394 = arith.addf %390, %393 : vector<8x128xf32>
    %c0_106 = arith.constant 0 : index
    %c0_107 = arith.constant 0 : index
    %395 = vector.load %arg4[%c0_106, %c0_107] : memref<8x128xf32, #tpu.memory_space<vmem>>, vector<8x128xf32>
    tpu.vector_store %arg4[%c0_106, %c0_107], %394 {strides = array<i32>} : memref<8x128xf32, #tpu.memory_space<vmem>>, vector<8x128xf32>,
    return
  }
}

</mosaic_0001>

<bundles_post_ra>
// kernel: tpu_custom_call.1
= control target key start
LH: loop header
LB: loop body
LE: loop exit
PB: predicated region body
PF: predicated region fallthrough
CT: control target
= control target key end

     0   :  { %9 = vsyncpa [#allocation3], 0  ;;  %s3613_s0 = inlined_call_operand.hbm [shape: f32[8,8,16], index: 0, kind: input, shape index: {}]   ;;  %s3614_s1 = inlined_call_operand.hbm [shape: f32[2,72,128], index: 1, kind: input, shape index: {}]   ;;  %s3615_s2 = inlined_call_operand.hbm [shape: f32[4,128,128], index: 2, kind: input, shape index: {}]   ;;  %s3616_s3 = inlined_call_operand.vmem [shape: f32[4,1,128], index: 3, kind: input, shape index: {}]   ;;  %s3617_s4 = inlined_call_operand.hbm [shape: f32[8,128], index: 4, kind: output, shape index: {}]  }
   0x1   :  { %10 = vsyncpa [#allocation6], 0 }
   0x2   :  { %11 = vsyncpa [#allocation4], 0  ;;  %s3129_s15 = smov [#allocation5]   ;;  %s3130_s17 = smov [#allocation2]  }
   0x3   :  { %s29_s16 = sshll.u32 %s3129_s15, 4  ;;  %s17_s18 = sshll.u32 %s3130_s17, 4  ;;  %s30_s16 = int_to_ptr.vmem [resolvable:$true] %s29_s16  ;;  %s18_s18 = int_to_ptr.vmem [resolvable:$true] %s17_s18 }
   0x4   :  { %s3051_s19 = scalar_lea.vmem %s30_s16, 2304  ;;  %p3056_p1 = scmp.lt.s32.totalorder %s30_s16, %s30_s16 }
   0x5   :  { %p3052_p0 = scmp.ne.s32.totalorder %s30_s16, %s3051_s19  ;;  %p3057_p2 = scmp.lt.s32.totalorder %s3051_s19, %s3051_s19 }
   0x7   :  { %p3058_p3 = por %p3057_p2, %p3056_p1 }
   0x9   :  { %p3059_p4 = pnand %p3058_p3, %p3052_p0 }
   0xb   :  { %3062 = shalt.err (!%p3059_p4)
}
   0xc   :  { %s3131_s20 = smov 128   ;;  %s3132_s21 = smov 8  }
   0xd   :  { %35 = dma.hbm_to_vmem [thread:$0]  %s3614_s1, 2304, %s30_s16, [#allocation6], %s3131_s20, %s3131_s20, %s3132_s21  }
   0xe   :  { %s3071_s24 = scalar_lea.vmem %s18_s18, 1024  ;;  %p3076_p6 = scmp.lt.s32.totalorder %s18_s18, %s18_s18 }
   0xf   :  { %p3072_p5 = scmp.ne.s32.totalorder %s18_s18, %s3071_s24  ;;  %p3077_p7 = scmp.lt.s32.totalorder %s3071_s24, %s3071_s24 }
  0x11   :  { %p3078_p8 = por %p3077_p7, %p3076_p6 }
  0x13   :  { %p3079_p9 = pnand %p3078_p8, %p3072_p5 }
  0x15   :  { %3082 = shalt.err (!%p3079_p9)
}
  0x16   :  { %23 = dma.hbm_to_vmem [thread:$0]  %s3613_s0, 1024, %s18_s18, [#allocation3], %s3131_s20, %s3131_s20, %s3132_s21  }
  0x17   :  { %s3133_s27 = smov [#allocation7]  }
  0x18   :  { %s41_s28 = sshll.u32 %s3133_s27, 4  ;;  %s42_s28 = int_to_ptr.vmem [resolvable:$true] %s41_s28 }
  0x19   :  { %s3091_s29 = scalar_lea.vmem %s42_s28, 8192  ;;  %p3096_p11 = scmp.lt.s32.totalorder %s42_s28, %s42_s28 }
  0x1a   :  { %p3092_p10 = scmp.ne.s32.totalorder %s42_s28, %s3091_s29  ;;  %p3097_p12 = scmp.lt.s32.totalorder %s3091_s29, %s3091_s29 }
  0x1c   :  { %p3098_p13 = por %p3097_p12, %p3096_p11 }
  0x1e   :  { %p3099_p0 = pnand %p3098_p13, %p3092_p10 }
  0x20   :  { %3102 = shalt.err (!%p3099_p0)
}
  0x21   :  { %47 = dma.hbm_to_vmem [thread:$0]  %s3615_s2, 8192, %s42_s28, [#allocation6], %s3131_s20, %s3131_s20, %s3132_s21  }
  0x22   :  { %3123 = dma.done.wait [#allocation3], 1024  }
  0x23   :  { %3124 = vsyncadd [#allocation3], 4294966272 }
  0x24   :  { %3125 = dma.done.wait [#allocation6], 10496  }
  0x25   :  { %3126 = vsyncadd [#allocation6], 4294956800  ;;  %v3134_v0 = vmov 0.0   ;;  %vm3135_vm0 = vmmov 0   ;;  %v68_v1 = vld [vmem:[#allocation5 + $0x8] sm:$0xff]  ;;  %v67_v3 = vld [vmem:[#allocation5] sm:$0xff]  ;;  %v74_v9 = vlaneseq }
  0x26   :  { %2601 = vmatprep.subr.mxu1 %v3134_v0  ;;  %2609 = vmatprep.mubr.msk.f32.mxu1 %vm3135_vm0, %v3134_v0  ;;  %v3176_v2 = vld [vmem:[#allocation5 + $0x28] sm:$0xff]  ;;  %v3179_v4 = vld [vmem:[#allocation5 + $0x20] sm:$0xff]  ;;  %vm78_vm1 = vcmask 130048   ;;  %v3183_v7 = vld [vmem:[#allocation5 + $0x18] sm:$0xff]  ;;  %s3136_s0 = smov 32   ;;  %s3137_s2 = smov 64  }
  0x27   :  { %2585 = vmatprep.subr.mxu0 %v68_v1  ;;  %2602 = vmatpush3.msra.mxu1 %v3176_v2  ;;  %v59_v5 = vld [vmem:[#allocation2] sm:$0xff]  ;;  %v60_v6 = vld [vmem:[#allocation2 + $0x8] sm:$0xff]  ;;  %v3188_v8 = vld [vmem:[#allocation5 + $0x10] sm:$0xff]  ;;  %v3214_v10 = vshrl.u32 %v74_v9, 7  ;;  %vm208_vm2 = vcmask 261120   ;;  %s3138_s13 = smov [#allocation8]  }
  0x28   :  { %2586 = vmatpush3.msra.mxu0 %v68_v1  ;;  %2603 = vmatprep.subr.mxu1 %v3134_v0  ;;  %v73_v12 = vld [vmem:[#allocation5 + $0x30] sm:$0xff]  ;;  %v62_v51 = vld [vmem:[#allocation2 + $0x18] sm:$0xff]  ;;  %v63_v52 = vld [vmem:[#allocation2 + $0x20] sm:$0xff]  ;;  %s2335_s14 = sshll.u32 %s3138_s13, 4  ;;  %s2336_s14 = int_to_ptr.vmem [resolvable:$true] %s2335_s14 }
  0x29   :  { %2587 = vmatprep.subr.mxu0 %v67_v3  ;;  %2604 = vmatpush3.msra.mxu1 %v3179_v4  ;;  %v76_v11 = vsub.s32 0, %v3214_v10  ;;  %v61_v50 = vld [vmem:[#allocation2 + $0x10] sm:$0xff]  ;;  %v64_v53 = vld [vmem:[#allocation2 + $0x28] sm:$0xff]  ;;  %v66_v55 = vld [vmem:[#allocation2 + $0x38] sm:$0xff]  ;;  %s3103_s15 = scalar_lea.vmem %s2336_s14, 128  ;;  %p3108_p2 = scmp.lt.s32.totalorder %s2336_s14, %s2336_s14 }
  0x2a   :  { %2588 = vmatpush3.msra.mxu0 %v67_v3  ;;  %2589 = vmatprep.mubr.msk.f32.mxu0 %vm78_vm1, %v59_v5  ;;  %v65_v54 = vld [vmem:[#allocation2 + $0x30] sm:$0xff]  ;;  %p3104_p1 = scmp.ne.s32.totalorder %s2336_s14, %s3103_s15  ;;  %p3109_p3 = scmp.lt.s32.totalorder %s3103_s15, %s3103_s15 }
  0x2b   :  { %2605 = vmatprep.subr.mxu1 %v3134_v0  ;;  %2590 = vmatmul.mubr.msk.f32.vlgmr.msra.gmra.mxu0 %vm78_vm1, %v60_v6  ;;  %v3219_v14 = vrot.slane %v73_v12, %v76_v11 }
  0x2c   :  { %2606 = vmatpush3.msra.mxu1 %v3183_v7  ;;  %2623 = vmatprep.subr.mxu0 %v3134_v0  ;;  %p3110_p4 = por %p3109_p3, %p3108_p2 }
  0x2d   :  { %2607 = vmatprep.subr.mxu1 %v3134_v0  ;;  %2624 = vmatpush3.msra.mxu0 %v3176_v2 }
  0x2e   :  { %2608 = vmatpush3.msra.mxu1 %v3188_v8  ;;  %2625 = vmatprep.subr.mxu0 %v3134_v0  ;;  %p3111_p5 = pnand %p3110_p4, %p3104_p1 }
  0x2f   :  { %2610 = vmatmul.mubr.f32.vlgmr.msra.gmra.mxu1 %v3134_v0  ;;  %2612 = vmatprep.subr.mxu1 %v3134_v0 }
  0x30   :  { %2613 = vmatpush3.msra.mxu1 %v3176_v2  ;;  %2620 = vmatprep.mubr.msk.f32.mxu1 %vm3135_vm0, %v3134_v0 }
  0x31   :  { %2614 = vmatprep.subr.mxu1 %v3134_v0  ;;  %2626 = vmatpush3.msra.mxu0 %v3179_v4 }
  0x32   :  { %2615 = vmatpush3.msra.mxu1 %v3179_v4  ;;  %2627 = vmatprep.subr.mxu0 %v3134_v0 }
  0x33   :  { %2616 = vmatprep.subr.mxu1 %v3134_v0  ;;  %2628 = vmatpush3.msra.mxu0 %v3183_v7 }
  0x34   :  { %2617 = vmatpush3.msra.mxu1 %v3183_v7  ;;  %2629 = vmatprep.subr.mxu0 %v3134_v0 }
  0x35   :  { %2618 = vmatprep.subr.mxu1 %v3134_v0  ;;  %2630 = vmatpush3.msra.mxu0 %v3188_v8 }
  0x36   :  { %2619 = vmatpush3.msra.mxu1 %v3188_v8  ;;  %2645 = vmatprep.subr.mxu0 %v3134_v0 }
  0x37   :  { %2634 = vmatprep.subr.mxu1 %v3134_v0  ;;  %2592 = vmatprep.mubr.msk.f32.mxu0 %vm78_vm1, %v61_v50 }
  0x38   :  { %2593 = vmatmul.mubr.msk.f32.gmra.mxu0 %vm78_vm1, %v62_v51 }
  0x39   :  { %2595 = vmatprep.mubr.msk.f32.mxu0 %vm78_vm1, %v63_v52 }
  0x3c   :  { %2596 = vmatmul.mubr.msk.f32.gmra.mxu0 %vm78_vm1, %v64_v53 }
  0x3d   :  { %2598 = vmatprep.mubr.msk.f32.mxu0 %vm78_vm1, %v65_v54 }
  0x40   :  { %2599 = vmatmul.mubr.msk.f32.gmra.mxu0 %vm78_vm1, %v66_v55 }
  0x41   :  { %2631 = vmatprep.mubr.msk.f32.mxu0 %vm3135_vm0, %v3134_v0 }
  0xeb   :  { %v2591_v13 = vpop.f32.mrf.mxu0 }
  0xec   :  { %v175_v35 = vadd.f32 %v2591_v13, %v3219_v14 }
  0xed   :  { %v169_v15 = vpop.f32.mrf.mxu0 }
  0xee   :  { %v170_v16 = vadd.f32 %v169_v15, %v3219_v14 }
  0xef   :  { %v278_v17 = vpop.f32.mrf.mxu1 }
  0xf0   :  { %v282_v18 = vadd.f32 %v278_v17, %v170_v16 }
  0xf1   :  { %v2611_v19 = vpop.f32.mrf.mxu1 }
  0xf2   :  { %v2353_v20 = vmul.f32 -1.442695, %v282_v18 }
  0xf4   :  { %2947 = vpow2.f32 %v2353_v20 }
  0xf8   :  { %v2594_v60 = vpop.f32.mrf.mxu0 }
  0xfa   :  { %v179_v61 = vpop.f32.mrf.mxu0 }
  0xfb   :  { %v180_v5 = vadd.f32 %v179_v61, %v3219_v14 }
  0xfc   :  { %v3267_v62 = vpop.f32.mrf.mxu0 }
  0xfe   :  { %v3269_v63 = vpop.f32.mrf.mxu0 }
 0x100   :  { %v3271_v1 = vpop.f32.mrf.mxu0 }
 0x101   :  { %v2948_v21 = vpop.eup %2947 }
 0x102   :  { %v286_v22 = vadd.f32 1.0, %v2948_v21  ;;  %v3273_v3 = vpop.f32.mrf.mxu0 }
 0x104   :  { %2949 = vrcp.f32 %v286_v22 }
 0x111   :  { %v2950_v23 = vpop.eup %2949 }
 0x112   :  { %v289_v24 = vmul.f32 2.0, %v2950_v23  ;;  %v291_v28 = vmul.f32 0.0, %v2950_v23 }
 0x114   :  { %v2354_v25 = vadd.f32 -1.0, %v289_v24 }
 0x116   :  { %293 = vrot.lane.b32.xlu0 %v2354_v25, %s3136_s0 }
 0x188   :  { %v294_v26 = vpop.permute.xlu0 %293 }
 0x189   :  { %v296_v27 = vmul.f32 %v2950_v23, %v294_v26 }
 0x18b   :  { %298 = vrot.lane.b32.xlu0 %v296_v27, %s3136_s0 }
 0x1fd   :  { %v299_v29 = vpop.permute.xlu0 %298 }
 0x1fe   :  { %v301_v30 = vadd.f32 %v299_v29, %v291_v28  ;;  %v185_v29 = vadd.f32 %v2594_v60, %v3219_v14 }
 0x200   :  { %2951 = vtanh.f32 %v301_v30 }
 0x20d   :  { %v2952_v31 = vpop.eup %2951 }
 0x20e   :  { %304 = vrot.lane.b32.xlu1 %v2952_v31, %s3136_s0 }
 0x280   :  { %v305_v32 = vpop.permute.xlu1 %304 }
 0x281   :  { %v307_v33 = vmul.f32 %v2950_v23, %v305_v32 }
 0x283   :  { %309 = vrot.lane.b32.xlu1 %v307_v33, %s3137_s2 }
 0x2f5   :  { %v3226_v34 = vpop.permute.xlu1 %309 }
 0x2f6   :  { %2621 = vmatmul.mubr.msk.f32.vlgmr.msra.gmra.mxu1 %vm208_vm2, %v3226_v34 }
 0x2f7   :  { %2635 = vmatpush3.msra.mxu1 %v3176_v2  ;;  %2642 = vmatprep.mubr.msk.f32.mxu1 %vm3135_vm0, %v3134_v0 }
 0x2f8   :  { %2636 = vmatprep.subr.mxu1 %v3134_v0 }
 0x2f9   :  { %2637 = vmatpush3.msra.mxu1 %v3179_v4 }
 0x2fa   :  { %2638 = vmatprep.subr.mxu1 %v3134_v0 }
 0x2fb   :  { %2639 = vmatpush3.msra.mxu1 %v3183_v7 }
 0x2fc   :  { %2640 = vmatprep.subr.mxu1 %v3134_v0 }
 0x2fd   :  { %2641 = vmatpush3.msra.mxu1 %v3188_v8 }
 0x2fe   :  { %2656 = vmatprep.subr.mxu1 %v3134_v0 }
 0x3b6   :  { %v379_v36 = vpop.f32.mrf.mxu1 }
 0x3b7   :  { %v383_v37 = vadd.f32 %v379_v36, %v175_v35 }
 0x3b8   :  { %v2622_v38 = vpop.f32.mrf.mxu1 }
 0x3b9   :  { %v2356_v39 = vmul.f32 -1.442695, %v383_v37 }
 0x3bb   :  { %2953 = vpow2.f32 %v2356_v39 }
 0x3c8   :  { %v2954_v40 = vpop.eup %2953 }
 0x3c9   :  { %v387_v41 = vadd.f32 1.0, %v2954_v40 }
 0x3cb   :  { %2955 = vrcp.f32 %v387_v41 }
 0x3d8   :  { %v2956_v42 = vpop.eup %2955 }
 0x3d9   :  { %v390_v43 = vmul.f32 2.0, %v2956_v42  ;;  %v392_v47 = vmul.f32 %v2956_v42, %v301_v30 }
 0x3db   :  { %v2357_v44 = vadd.f32 -1.0, %v390_v43 }
 0x3dd   :  { %394 = vrot.lane.b32.xlu0 %v2357_v44, %s3136_s0 }
 0x44f   :  { %v395_v45 = vpop.permute.xlu0 %394 }
 0x450   :  { %v397_v46 = vmul.f32 %v2956_v42, %v395_v45 }
 0x452   :  { %399 = vrot.lane.b32.xlu1 %v397_v46, %s3136_s0 }
 0x4c4   :  { %v400_v48 = vpop.permute.xlu1 %399 }
 0x4c5   :  { %v402_v49 = vadd.f32 %v400_v48, %v392_v47 }
 0x4c7   :  { %2957 = vtanh.f32 %v402_v49 }
 0x4d4   :  { %v2958_v56 = vpop.eup %2957 }
 0x4d5   :  { %405 = vrot.lane.b32.xlu0 %v2958_v56, %s3136_s0 }
 0x547   :  { %v406_v57 = vpop.permute.xlu0 %405 }
 0x548   :  { %v408_v58 = vmul.f32 %v2956_v42, %v406_v57 }
 0x54a   :  { %410 = vrot.lane.b32.xlu1 %v408_v58, %s3137_s2 }
 0x5bc   :  { %v3253_v59 = vpop.permute.xlu1 %410 }
 0x5bd   :  { %2632 = vmatmul.mubr.msk.f32.vlgmr.msra.gmra.mxu0 %vm208_vm2, %v3253_v59 }
 0x5be   :  { %2646 = vmatpush3.msra.mxu0 %v3176_v2  ;;  %2653 = vmatprep.mubr.msk.f32.mxu0 %vm3135_vm0, %v3134_v0 }
 0x5bf   :  { %2647 = vmatprep.subr.mxu0 %v3134_v0 }
 0x5c0   :  { %2648 = vmatpush3.msra.mxu0 %v3179_v4 }
 0x5c1   :  { %2649 = vmatprep.subr.mxu0 %v3134_v0 }
 0x5c2   :  { %2650 = vmatpush3.msra.mxu0 %v3183_v7 }
 0x5c3   :  { %2651 = vmatprep.subr.mxu0 %v3134_v0 }
 0x5c4   :  { %2652 = vmatpush3.msra.mxu0 %v3188_v8 }
 0x5c5   :  { %2667 = vmatprep.subr.mxu0 %v3134_v0 }
 0x67d   :  { %v480_v6 = vpop.f32.mrf.mxu0 }
 0x67e   :  { %v484_v9 = vadd.f32 %v480_v6, %v180_v5 }
 0x67f   :  { %v2633_v12 = vpop.f32.mrf.mxu0 }
 0x680   :  { %v2359_v13 = vmul.f32 -1.442695, %v484_v9 }
 0x682   :  { %2959 = vpow2.f32 %v2359_v13 }
 0x68f   :  { %v2960_v15 = vpop.eup %2959 }
 0x690   :  { %v488_v16 = vadd.f32 1.0, %v2960_v15 }
 0x692   :  { %2961 = vrcp.f32 %v488_v16 }
 0x69f   :  { %v2962_v17 = vpop.eup %2961 }
 0x6a0   :  { %v491_v18 = vmul.f32 2.0, %v2962_v17  ;;  %v493_v22 = vmul.f32 %v2962_v17, %v402_v49  ;;  %v190_v49 = vadd.f32 %v3269_v63, %v3219_v14 }
 0x6a2   :  { %v2360_v19 = vadd.f32 -1.0, %v491_v18 }
 0x6a4   :  { %495 = vrot.lane.b32.xlu0 %v2360_v19, %s3136_s0 }
 0x716   :  { %v496_v20 = vpop.permute.xlu0 %495 }
 0x717   :  { %v498_v21 = vmul.f32 %v2962_v17, %v496_v20 }
 0x719   :  { %500 = vrot.lane.b32.xlu1 %v498_v21, %s3136_s0 }
 0x78b   :  { %v501_v23 = vpop.permute.xlu1 %500 }
 0x78c   :  { %v503_v24 = vadd.f32 %v501_v23, %v493_v22 }
 0x78e   :  { %2963 = vtanh.f32 %v503_v24 }
 0x79b   :  { %v2964_v25 = vpop.eup %2963 }
 0x79c   :  { %506 = vrot.lane.b32.xlu0 %v2964_v25, %s3136_s0 }
 0x80e   :  { %v507_v26 = vpop.permute.xlu0 %506 }
 0x80f   :  { %v509_v27 = vmul.f32 %v2962_v17, %v507_v26  ;;  %v1019_v26 = vld [vmem:[#allocation5 + $0x60] sm:$0xff] }
 0x811   :  { %511 = vrot.lane.b32.xlu1 %v509_v27, %s3137_s2 }
 0x883   :  { %v3280_v28 = vpop.permute.xlu1 %511 }
 0x884   :  { %2643 = vmatmul.mubr.msk.f32.vlgmr.msra.gmra.mxu1 %vm208_vm2, %v3280_v28 }
 0x885   :  { %2657 = vmatpush3.msra.mxu1 %v3176_v2  ;;  %2664 = vmatprep.mubr.msk.f32.mxu1 %vm3135_vm0, %v3134_v0 }
 0x886   :  { %2658 = vmatprep.subr.mxu1 %v3134_v0 }
 0x887   :  { %2659 = vmatpush3.msra.mxu1 %v3179_v4 }
 0x888   :  { %2660 = vmatprep.subr.mxu1 %v3134_v0 }
 0x889   :  { %2661 = vmatpush3.msra.mxu1 %v3183_v7 }
 0x88a   :  { %2662 = vmatprep.subr.mxu1 %v3134_v0 }
 0x88b   :  { %2663 = vmatpush3.msra.mxu1 %v3188_v8 }
 0x88c   :  { %2678 = vmatprep.subr.mxu1 %v3134_v0 }
 0x944   :  { %v581_v30 = vpop.f32.mrf.mxu1 }
 0x945   :  { %v585_v31 = vadd.f32 %v581_v30, %v185_v29 }
 0x946   :  { %v2644_v32 = vpop.f32.mrf.mxu1 }
 0x947   :  { %v2362_v33 = vmul.f32 -1.442695, %v585_v31  ;;  %v1018_v32 = vld [vmem:[#allocation5 + $0x58] sm:$0xff] }
 0x949   :  { %2965 = vpow2.f32 %v2362_v33  ;;  %v1017_v33 = vld [vmem:[#allocation5 + $0x50] sm:$0xff] }
 0x956   :  { %v2966_v35 = vpop.eup %2965 }
 0x957   :  { %v589_v36 = vadd.f32 1.0, %v2966_v35  ;;  %v1016_v35 = vld [vmem:[#allocation5 + $0x48] sm:$0xff] }
 0x959   :  { %2967 = vrcp.f32 %v589_v36 }
 0x966   :  { %v2968_v37 = vpop.eup %2967 }
 0x967   :  { %v592_v38 = vmul.f32 2.0, %v2968_v37  ;;  %v594_v42 = vmul.f32 %v2968_v37, %v503_v24 }
 0x969   :  { %v2363_v39 = vadd.f32 -1.0, %v592_v38 }
 0x96b   :  { %596 = vrot.lane.b32.xlu0 %v2363_v39, %s3136_s0 }
 0x9dd   :  { %v597_v40 = vpop.permute.xlu0 %596 }
 0x9de   :  { %v599_v41 = vmul.f32 %v2968_v37, %v597_v40 }
 0x9e0   :  { %601 = vrot.lane.b32.xlu1 %v599_v41, %s3136_s0 }
 0xa52   :  { %v602_v43 = vpop.permute.xlu1 %601 }
 0xa53   :  { %v604_v44 = vadd.f32 %v602_v43, %v594_v42 }
 0xa55   :  { %2969 = vtanh.f32 %v604_v44 }
 0xa62   :  { %v2970_v45 = vpop.eup %2969 }
 0xa63   :  { %607 = vrot.lane.b32.xlu0 %v2970_v45, %s3136_s0 }
 0xad5   :  { %v608_v46 = vpop.permute.xlu0 %607 }
 0xad6   :  { %v610_v47 = vmul.f32 %v2968_v37, %v608_v46 }
 0xad8   :  { %612 = vrot.lane.b32.xlu1 %v610_v47, %s3137_s2 }
 0xb4a   :  { %v3299_v48 = vpop.permute.xlu1 %612 }
 0xb4b   :  { %2654 = vmatmul.mubr.msk.f32.vlgmr.msra.gmra.mxu0 %vm208_vm2, %v3299_v48 }
 0xb4c   :  { %2668 = vmatpush3.msra.mxu0 %v3176_v2  ;;  %2675 = vmatprep.mubr.msk.f32.mxu0 %vm3135_vm0, %v3134_v0 }
 0xb4d   :  { %2669 = vmatprep.subr.mxu0 %v3134_v0 }
 0xb4e   :  { %2670 = vmatpush3.msra.mxu0 %v3179_v4 }
 0xb4f   :  { %2671 = vmatprep.subr.mxu0 %v3134_v0 }
 0xb50   :  { %2672 = vmatpush3.msra.mxu0 %v3183_v7 }
 0xb51   :  { %2673 = vmatprep.subr.mxu0 %v3134_v0 }
 0xb52   :  { %2674 = vmatpush3.msra.mxu0 %v3188_v8 }
 0xb53   :  { %2689 = vmatprep.subr.mxu0 %v1019_v26 }
 0xc0b   :  { %v682_v50 = vpop.f32.mrf.mxu0 }
 0xc0c   :  { %v686_v51 = vadd.f32 %v682_v50, %v190_v49  ;;  %v3358_v49 = vld [vmem:[#allocation5 + $0x78] sm:$0xff]  ;;  %v3362_v50 = vld [vmem:[#allocation5 + $0x70] sm:$0xff] }
 0xc0d   :  { %v2655_v52 = vpop.f32.mrf.mxu0 }
 0xc0e   :  { %v2365_v53 = vmul.f32 -1.442695, %v686_v51  ;;  %v3366_v51 = vld [vmem:[#allocation5 + $0x68] sm:$0xff] }
 0xc10   :  { %2971 = vpow2.f32 %v2365_v53 }
 0xc1d   :  { %v2972_v54 = vpop.eup %2971 }
 0xc1e   :  { %v690_v55 = vadd.f32 1.0, %v2972_v54 }
 0xc20   :  { %2973 = vrcp.f32 %v690_v55  ;;  %v205_v55 = vadd.f32 %v3271_v1, %v3219_v14 }
 0xc2d   :  { %v2974_v56 = vpop.eup %2973 }
 0xc2e   :  { %v693_v57 = vmul.f32 2.0, %v2974_v56  ;;  %v695_v5 = vmul.f32 %v2974_v56, %v604_v44 }
 0xc30   :  { %v2366_v58 = vadd.f32 -1.0, %v693_v57 }
 0xc32   :  { %697 = vrot.lane.b32.xlu0 %v2366_v58, %s3136_s0 }
 0xca4   :  { %v698_v60 = vpop.permute.xlu0 %697 }
 0xca5   :  { %v700_v61 = vmul.f32 %v2974_v56, %v698_v60  ;;  %v1024_v60 = vld [vmem:[#allocation5 + $0x88] sm:$0xff] }
 0xca7   :  { %702 = vrot.lane.b32.xlu1 %v700_v61, %s3136_s0 }
 0xd19   :  { %v703_v6 = vpop.permute.xlu1 %702 }
 0xd1a   :  { %v705_v63 = vadd.f32 %v703_v6, %v695_v5  ;;  %v3401_v6 = vrot.slane %v1024_v60, %v76_v11 }
 0xd1c   :  { %2975 = vtanh.f32 %v705_v63 }
 0xd29   :  { %v2976_v9 = vpop.eup %2975 }
 0xd2a   :  { %708 = vrot.lane.b32.xlu0 %v2976_v9, %s3136_s0 }
 0xd9c   :  { %v709_v12 = vpop.permute.xlu0 %708 }
 0xd9d   :  { %v711_v13 = vmul.f32 %v2974_v56, %v709_v12 }
 0xd9f   :  { %713 = vrot.lane.b32.xlu1 %v711_v13, %s3137_s2 }
 0xe11   :  { %v714_v15 = vpop.permute.xlu1 %713 }
 0xe12   :  { %2665 = vmatmul.mubr.msk.f32.vlgmr.msra.gmra.mxu1 %vm208_vm2, %v714_v15 }
 0xe13   :  { %2679 = vmatpush3.msra.mxu1 %v3176_v2  ;;  %2686 = vmatprep.mubr.msk.f32.mxu1 %vm3135_vm0, %v3134_v0  ;;  %v195_v2 = vadd.f32 %v3267_v62, %v3219_v14 }
 0xe14   :  { %2680 = vmatprep.subr.mxu1 %v3134_v0 }
 0xe15   :  { %2681 = vmatpush3.msra.mxu1 %v3179_v4 }
 0xe16   :  { %2682 = vmatprep.subr.mxu1 %v3134_v0 }
 0xe17   :  { %2683 = vmatpush3.msra.mxu1 %v3183_v7 }
 0xe18   :  { %2684 = vmatprep.subr.mxu1 %v3134_v0 }
 0xe19   :  { %2685 = vmatpush3.msra.mxu1 %v3188_v8 }
 0xe1a   :  { %2709 = vmatprep.subr.mxu1 %v3134_v0 }
 0xed2   :  { %v783_v16 = vpop.f32.mrf.mxu1 }
 0xed3   :  { %v787_v17 = vadd.f32 %v783_v16, %v195_v2 }
 0xed4   :  { %v2666_v18 = vpop.f32.mrf.mxu1 }
 0xed5   :  { %v2368_v19 = vmul.f32 -1.442695, %v787_v17 }
 0xed7   :  { %2977 = vpow2.f32 %v2368_v19 }
 0xee4   :  { %v2978_v20 = vpop.eup %2977 }
 0xee5   :  { %v791_v4 = vadd.f32 1.0, %v2978_v20 }
 0xee7   :  { %2979 = vrcp.f32 %v791_v4 }
 0xef4   :  { %v2980_v21 = vpop.eup %2979 }
 0xef5   :  { %v794_v22 = vmul.f32 2.0, %v2980_v21  ;;  %v796_v24 = vmul.f32 %v2980_v21, %v705_v63 }
 0xef7   :  { %v2369_v7 = vadd.f32 -1.0, %v794_v22 }
 0xef9   :  { %798 = vrot.lane.b32.xlu0 %v2369_v7, %s3136_s0 }
 0xf6b   :  { %v799_v23 = vpop.permute.xlu0 %798 }
 0xf6c   :  { %v801_v8 = vmul.f32 %v2980_v21, %v799_v23 }
 0xf6e   :  { %803 = vrot.lane.b32.xlu1 %v801_v8, %s3136_s0 }
 0xfe0   :  { %v804_v25 = vpop.permute.xlu1 %803 }
 0xfe1   :  { %v806_v62 = vadd.f32 %v804_v25, %v796_v24 }
 0xfe3   :  { %2981 = vtanh.f32 %v806_v62 }
 0xff0   :  { %v2982_v27 = vpop.eup %2981 }
 0xff1   :  { %809 = vrot.lane.b32.xlu0 %v2982_v27, %s3136_s0 }
0x1063   :  { %v810_v29 = vpop.permute.xlu0 %809 }
0x1064   :  { %v812_v30 = vmul.f32 %v2980_v21, %v810_v29 }
0x1066   :  { %814 = vrot.lane.b32.xlu1 %v812_v30, %s3137_s2 }
0x10d8   :  { %v815_v31 = vpop.permute.xlu1 %814 }
0x10d9   :  { %2676 = vmatmul.mubr.msk.f32.vlgmr.msra.gmra.mxu0 %vm208_vm2, %v815_v31 }
0x10da   :  { %2690 = vmatpush3.msra.mxu0 %v1019_v26  ;;  %2697 = vmatprep.mubr.msk.f32.mxu0 %vm208_vm2, %v3226_v34  ;;  %v200_v34 = vadd.f32 %v3273_v3, %v3219_v14 }
0x10db   :  { %2691 = vmatprep.subr.mxu0 %v1018_v32 }
0x10dc   :  { %2692 = vmatpush3.msra.mxu0 %v1018_v32 }
0x10dd   :  { %2693 = vmatprep.subr.mxu0 %v1017_v33 }
0x10de   :  { %2694 = vmatpush3.msra.mxu0 %v1017_v33 }
0x10df   :  { %2695 = vmatprep.subr.mxu0 %v1016_v35 }
0x10e0   :  { %2696 = vmatpush3.msra.mxu0 %v1016_v35 }
0x10e1   :  { %2698 = vmatmul.mubr.msk.f32.vlgmr.msra.gmra.mxu0 %vm208_vm2, %v3253_v59  ;;  %2731 = vmatprep.subr.mxu0 %v3134_v0 }
0x10e2   :  { %2700 = vmatprep.mubr.msk.f32.mxu0 %vm208_vm2, %v3280_v28 }
0x10e5   :  { %2701 = vmatmul.mubr.msk.f32.gmra.mxu0 %vm208_vm2, %v3299_v48  ;;  %v3355_v48 = vld [vmem:[#allocation5 + $0x80] sm:$0xff] }
0x10e6   :  { %2703 = vmatprep.mubr.msk.f32.mxu0 %vm208_vm2, %v714_v15  ;;  %2732 = vmatpush3.msra.mxu0 %v3355_v48 }
0x10e7   :  { %2733 = vmatprep.subr.mxu0 %v3134_v0 }
0x10e8   :  { %2734 = vmatpush3.msra.mxu0 %v3358_v49 }
0x10e9   :  { %2704 = vmatmul.mubr.msk.f32.gmra.mxu0 %vm208_vm2, %v815_v31  ;;  %2735 = vmatprep.subr.mxu0 %v3134_v0 }
0x10ea   :  { %2736 = vmatpush3.msra.mxu0 %v3362_v50 }
0x10eb   :  { %2737 = vmatprep.subr.mxu0 %v3134_v0 }
0x10ec   :  { %2738 = vmatpush3.msra.mxu0 %v3366_v51 }
0x10ed   :  { %2753 = vmatprep.subr.mxu0 %v3134_v0 }
0x1199   :  { %v884_v36 = vpop.f32.mrf.mxu0 }
0x119a   :  { %v888_v37 = vadd.f32 %v884_v36, %v200_v34 }
0x119b   :  { %v2677_v38 = vpop.f32.mrf.mxu0 }
0x119c   :  { %v2371_v39 = vmul.f32 -1.442695, %v888_v37 }
0x119e   :  { %2983 = vpow2.f32 %v2371_v39 }
0x11a1   :  { %v3397_v56 = vpop.f32.mrf.mxu0 }
0x11a2   :  { %v1106_v36 = vadd.f32 %v3397_v56, %v3401_v6 }
0x11a3   :  { %v1100_v5 = vpop.f32.mrf.mxu0 }
0x11a4   :  { %v1101_v63 = vadd.f32 %v1100_v5, %v3401_v6 }
0x11ab   :  { %v2984_v59 = vpop.eup %2983 }
0x11ac   :  { %v892_v40 = vadd.f32 1.0, %v2984_v59 }
0x11ae   :  { %2985 = vrcp.f32 %v892_v40 }
0x11bb   :  { %v2986_v41 = vpop.eup %2985 }
0x11bc   :  { %v895_v28 = vmul.f32 2.0, %v2986_v41  ;;  %v897_v45 = vmul.f32 %v2986_v41, %v806_v62 }
0x11be   :  { %v2372_v42 = vadd.f32 -1.0, %v895_v28 }
0x11c0   :  { %899 = vrot.lane.b32.xlu0 %v2372_v42, %s3136_s0 }
0x1232   :  { %v900_v43 = vpop.permute.xlu0 %899 }
0x1233   :  { %v902_v44 = vmul.f32 %v2986_v41, %v900_v43 }
0x1235   :  { %904 = vrot.lane.b32.xlu1 %v902_v44, %s3136_s0 }
0x12a7   :  { %v905_v46 = vpop.permute.xlu1 %904 }
0x12a8   :  { %v3351_v3 = vadd.f32 %v905_v46, %v897_v45 }
0x12aa   :  { %2987 = vtanh.f32 %v3351_v3 }
0x12b7   :  { %v2988_v47 = vpop.eup %2987 }
0x12b8   :  { %910 = vrot.lane.b32.xlu0 %v2988_v47, %s3136_s0 }
0x132a   :  { %v911_v52 = vpop.permute.xlu0 %910 }
0x132b   :  { %v913_v53 = vmul.f32 %v2986_v41, %v911_v52 }
0x132d   :  { %915 = vrot.lane.b32.xlu1 %v913_v53, %s3137_s2 }
0x139f   :  { %v916_v54 = vpop.permute.xlu1 %915 }
0x13a0   :  { %2687 = vmatmul.mubr.msk.f32.vlgmr.msra.gmra.mxu1 %vm208_vm2, %v916_v54  ;;  %2706 = vmatprep.mubr.msk.f32.mxu0 %vm208_vm2, %v916_v54 }
0x13a1   :  { %2710 = vmatpush3.msra.mxu1 %v3355_v48  ;;  %2717 = vmatprep.mubr.msk.f32.mxu1 %vm3135_vm0, %v3134_v0 }
0x13a2   :  { %2711 = vmatprep.subr.mxu1 %v3134_v0 }
0x13a3   :  { %2712 = vmatpush3.msra.mxu1 %v3358_v49 }
0x13a4   :  { %2713 = vmatprep.subr.mxu1 %v3134_v0 }
0x13a5   :  { %2714 = vmatpush3.msra.mxu1 %v3362_v50 }
0x13a6   :  { %2715 = vmatprep.subr.mxu1 %v3134_v0 }
0x13a7   :  { %2716 = vmatpush3.msra.mxu1 %v3366_v51 }
0x13a8   :  { %2718 = vmatmul.mubr.f32.vlgmr.msra.gmra.mxu1 %v3134_v0  ;;  %2720 = vmatprep.subr.mxu1 %v3134_v0 }
0x13a9   :  { %2721 = vmatpush3.msra.mxu1 %v3355_v48  ;;  %2728 = vmatprep.mubr.msk.f32.mxu1 %vm3135_vm0, %v3134_v0 }
0x13aa   :  { %2722 = vmatprep.subr.mxu1 %v3134_v0 }
0x13ab   :  { %2723 = vmatpush3.msra.mxu1 %v3358_v49 }
0x13ac   :  { %2724 = vmatprep.subr.mxu1 %v3134_v0 }
0x13ad   :  { %2725 = vmatpush3.msra.mxu1 %v3362_v50 }
0x13ae   :  { %2726 = vmatprep.subr.mxu1 %v3134_v0 }
0x13af   :  { %2727 = vmatpush3.msra.mxu1 %v3366_v51 }
0x13b0   :  { %2742 = vmatprep.subr.mxu1 %v3134_v0 }
0x1460   :  { %v985_v57 = vpop.f32.mrf.mxu1 }
0x1461   :  { %v989_v58 = vadd.f32 %v985_v57, %v205_v55  ;;  %v2702_v57 = vpop.f32.mrf.mxu0 }
0x1462   :  { %v2688_v61 = vpop.f32.mrf.mxu1 }
0x1463   :  { %v2374_v10 = vmul.f32 -1.442695, %v989_v58  ;;  %v1110_v58 = vpop.f32.mrf.mxu0 }
0x1465   :  { %v3444_v60 = vpop.f32.mrf.mxu0 }
0x1467   :  { %v3446_v61 = vpop.f32.mrf.mxu0 }
0x1468   :  { %v1205_v9 = vpop.f32.mrf.mxu1 }
0x1469   :  { %v1209_v12 = vadd.f32 %v1205_v9, %v1101_v63  ;;  %v1111_v9 = vadd.f32 %v1110_v58, %v3401_v6 }
0x146a   :  { %v2719_v13 = vpop.f32.mrf.mxu1 }
0x146b   :  { %v2384_v15 = vmul.f32 -1.442695, %v1209_v12 }
0x146d   :  { %2989 = vpow2.f32 %v2384_v15 }
0x147a   :  { %v2990_v2 = vpop.eup %2989 }
0x147b   :  { %v1213_v14 = vadd.f32 1.0, %v2990_v2 }
0x147d   :  { %2991 = vrcp.f32 %v1213_v14 }
0x147e   :  { %2993 = vpow2.f32 %v2374_v10 }
0x148a   :  { %v2992_v1 = vpop.eup %2991 }
0x148b   :  { %v1216_v16 = vmul.f32 2.0, %v2992_v1  ;;  %v2994_v11 = vpop.eup %2993  ;;  %v1218_v4 = vmul.f32 0.0, %v2992_v1 }
0x148c   :  { %v993_v20 = vadd.f32 1.0, %v2994_v11 }
0x148d   :  { %v2385_v17 = vadd.f32 -1.0, %v1216_v16 }
0x148e   :  { %2995 = vrcp.f32 %v993_v20 }
0x148f   :  { %1220 = vrot.lane.b32.xlu0 %v2385_v17, %s3136_s0 }
0x149b   :  { %v2996_v7 = vpop.eup %2995 }
0x149c   :  { %v996_v23 = vmul.f32 2.0, %v2996_v7  ;;  %v998_v30 = vmul.f32 %v2996_v7, %v3351_v3 }
0x149e   :  { %v2375_v24 = vadd.f32 -1.0, %v996_v23 }
0x1501   :  { %v1221_v18 = vpop.permute.xlu0 %1220 }
0x1502   :  { %v1223_v19 = vmul.f32 %v2992_v1, %v1221_v18 }
0x1504   :  { %1225 = vrot.lane.b32.xlu1 %v1223_v19, %s3136_s0 }
0x1576   :  { %v1226_v21 = vpop.permute.xlu1 %1225 }
0x1577   :  { %v1228_v22 = vadd.f32 %v1226_v21, %v1218_v4 }
0x1579   :  { %2997 = vtanh.f32 %v1228_v22 }
0x1586   :  { %v2998_v8 = vpop.eup %2997 }
0x1587   :  { %1231 = vrot.lane.b32.xlu0 %v2998_v8, %s3136_s0  ;;  %v1116_v8 = vadd.f32 %v2702_v57, %v3401_v6 }
0x158b   :  { %1000 = vrot.lane.b32.xlu0 %v2375_v24, %s3136_s0 }
0x15f9   :  { %v1232_v25 = vpop.permute.xlu0 %1231 }
0x15fa   :  { %v1234_v62 = vmul.f32 %v2992_v1, %v1232_v25 }
0x15fc   :  { %1236 = vrot.lane.b32.xlu1 %v1234_v62, %s3137_s2 }
0x15fd   :  { %v1001_v26 = vpop.permute.xlu0 %1000 }
0x15fe   :  { %v1003_v27 = vmul.f32 %v2996_v7, %v1001_v26 }
0x1600   :  { %1005 = vrot.lane.b32.xlu0 %v1003_v27, %s3136_s0 }
0x166e   :  { %v1237_v29 = vpop.permute.xlu1 %1236 }
0x166f   :  { %2729 = vmatmul.mubr.msk.f32.vlgmr.msra.gmra.mxu1 %vm208_vm2, %v1237_v29 }
0x1670   :  { %2743 = vmatpush3.msra.mxu1 %v3355_v48  ;;  %2750 = vmatprep.mubr.msk.f32.mxu1 %vm3135_vm0, %v3134_v0 }
0x1671   :  { %2744 = vmatprep.subr.mxu1 %v3134_v0 }
0x1672   :  { %v1006_v31 = vpop.permute.xlu0 %1005  ;;  %2745 = vmatpush3.msra.mxu1 %v3358_v49 }
0x1673   :  { %v1008_v32 = vadd.f32 %v1006_v31, %v998_v30  ;;  %2746 = vmatprep.subr.mxu1 %v3134_v0 }
0x1674   :  { %2747 = vmatpush3.msra.mxu1 %v3362_v50 }
0x1675   :  { %2999 = vtanh.f32 %v1008_v32  ;;  %2748 = vmatprep.subr.mxu1 %v3134_v0 }
0x1676   :  { %2749 = vmatpush3.msra.mxu1 %v3366_v51 }
0x1677   :  { %2764 = vmatprep.subr.mxu1 %v3134_v0 }
0x1682   :  { %v3000_v33 = vpop.eup %2999 }
0x1683   :  { %1011 = vrot.lane.b32.xlu0 %v3000_v33, %s3136_s0 }
0x16f5   :  { %v1012_v35 = vpop.permute.xlu0 %1011 }
0x16f6   :  { %v1014_v34 = vmul.f32 %v2996_v7, %v1012_v35 }
0x16f8   :  { %1030 = vrot.lane.b32.xlu0 %v1014_v34, %s3137_s2 }
0x172f   :  { %v1306_v37 = vpop.f32.mrf.mxu1 }
0x1730   :  { %v1310_v38 = vadd.f32 %v1306_v37, %v1106_v36 }
0x1731   :  { %v2730_v39 = vpop.f32.mrf.mxu1 }
0x1732   :  { %v2387_v59 = vmul.f32 -1.442695, %v1310_v38 }
0x1734   :  { %3001 = vpow2.f32 %v2387_v59 }
0x1741   :  { %v3002_v40 = vpop.eup %3001 }
0x1742   :  { %v1314_v41 = vadd.f32 1.0, %v3002_v40 }
0x1744   :  { %3003 = vrcp.f32 %v1314_v41  ;;  %v1121_v41 = vadd.f32 %v3446_v61, %v3401_v6 }
0x1751   :  { %v3004_v28 = vpop.eup %3003 }
0x1752   :  { %v1317_v42 = vmul.f32 2.0, %v3004_v28  ;;  %v1319_v3 = vmul.f32 %v3004_v28, %v1228_v22 }
0x1754   :  { %v2388_v43 = vadd.f32 -1.0, %v1317_v42 }
0x1756   :  { %1321 = vrot.lane.b32.xlu1 %v2388_v43, %s3136_s0 }
0x176a   :  { %v1031_v44 = vpop.permute.xlu0 %1030 }
0x176b   :  { %2707 = vmatmul.mubr.msk.f32.gmra.mxu0 %vm208_vm2, %v1031_v44 }
0x176c   :  { %2739 = vmatprep.mubr.msk.f32.mxu0 %vm3135_vm0, %v3134_v0 }
0x17c8   :  { %v1322_v45 = vpop.permute.xlu1 %1321 }
0x17c9   :  { %v1324_v46 = vmul.f32 %v3004_v28, %v1322_v45 }
0x17cb   :  { %1326 = vrot.lane.b32.xlu1 %v1324_v46, %s3136_s0 }
0x182b   :  { %v3448_v5 = vpop.f32.mrf.mxu0 }
0x182d   :  { %v3450_v63 = vpop.f32.mrf.mxu0 }
0x183d   :  { %v1327_v47 = vpop.permute.xlu1 %1326 }
0x183e   :  { %v1329_v52 = vadd.f32 %v1327_v47, %v1319_v3 }
0x1840   :  { %3005 = vtanh.f32 %v1329_v52 }
0x184d   :  { %v3006_v53 = vpop.eup %3005 }
0x184e   :  { %1332 = vrot.lane.b32.xlu1 %v3006_v53, %s3136_s0 }
0x18c0   :  { %v1333_v54 = vpop.permute.xlu1 %1332 }
0x18c1   :  { %v1335_v55 = vmul.f32 %v3004_v28, %v1333_v54 }
0x18c3   :  { %1337 = vrot.lane.b32.xlu1 %v1335_v55, %s3137_s2 }
0x1935   :  { %v1338_v56 = vpop.permute.xlu1 %1337 }
0x1936   :  { %2740 = vmatmul.mubr.msk.f32.vlgmr.msra.gmra.mxu0 %vm208_vm2, %v1338_v56 }
0x1937   :  { %2754 = vmatpush3.msra.mxu0 %v3355_v48  ;;  %2761 = vmatprep.mubr.msk.f32.mxu0 %vm3135_vm0, %v3134_v0 }
0x1938   :  { %2755 = vmatprep.subr.mxu0 %v3134_v0 }
0x1939   :  { %2756 = vmatpush3.msra.mxu0 %v3358_v49 }
0x193a   :  { %2757 = vmatprep.subr.mxu0 %v3134_v0 }
0x193b   :  { %2758 = vmatpush3.msra.mxu0 %v3362_v50 }
0x193c   :  { %2759 = vmatprep.subr.mxu0 %v3134_v0 }
0x193d   :  { %2760 = vmatpush3.msra.mxu0 %v3366_v51 }
0x193e   :  { %2775 = vmatprep.subr.mxu0 %v3134_v0 }
0x19f6   :  { %v1407_v12 = vpop.f32.mrf.mxu0 }
0x19f7   :  { %v1411_v13 = vadd.f32 %v1407_v12, %v1111_v9 }
0x19f8   :  { %v2741_v15 = vpop.f32.mrf.mxu0 }
0x19f9   :  { %v2390_v2 = vmul.f32 -1.442695, %v1411_v13 }
0x19fb   :  { %3007 = vpow2.f32 %v2390_v2 }
0x1a08   :  { %v3008_v14 = vpop.eup %3007 }
0x1a09   :  { %v1415_v1 = vadd.f32 1.0, %v3008_v14 }
0x1a0b   :  { %3009 = vrcp.f32 %v1415_v1 }
0x1a18   :  { %v3010_v16 = vpop.eup %3009 }
0x1a19   :  { %v1418_v17 = vmul.f32 2.0, %v3010_v16  ;;  %v1420_v11 = vmul.f32 %v3010_v16, %v1329_v52 }
0x1a1b   :  { %v2391_v18 = vadd.f32 -1.0, %v1418_v17 }
0x1a1d   :  { %1422 = vrot.lane.b32.xlu0 %v2391_v18, %s3136_s0 }
0x1a8f   :  { %v1423_v19 = vpop.permute.xlu0 %1422 }
0x1a90   :  { %v1425_v10 = vmul.f32 %v3010_v16, %v1423_v19 }
0x1a92   :  { %1427 = vrot.lane.b32.xlu1 %v1425_v10, %s3136_s0 }
0x1b04   :  { %v1428_v20 = vpop.permute.xlu1 %1427 }
0x1b05   :  { %v1430_v4 = vadd.f32 %v1428_v20, %v1420_v11 }
0x1b07   :  { %3011 = vtanh.f32 %v1430_v4 }
0x1b14   :  { %v3012_v21 = vpop.eup %3011 }
0x1b15   :  { %1433 = vrot.lane.b32.xlu0 %v3012_v21, %s3136_s0 }
0x1b87   :  { %v1434_v22 = vpop.permute.xlu0 %1433 }
0x1b88   :  { %v1436_v7 = vmul.f32 %v3010_v16, %v1434_v22  ;;  %v1131_v22 = vadd.f32 %v3450_v63, %v3401_v6 }
0x1b8a   :  { %1438 = vrot.lane.b32.xlu1 %v1436_v7, %s3137_s2 }
0x1bfc   :  { %v1439_v23 = vpop.permute.xlu1 %1438 }
0x1bfd   :  { %2751 = vmatmul.mubr.msk.f32.vlgmr.msra.gmra.mxu1 %vm208_vm2, %v1439_v23 }
0x1bfe   :  { %2765 = vmatpush3.msra.mxu1 %v3355_v48  ;;  %2772 = vmatprep.mubr.msk.f32.mxu1 %vm3135_vm0, %v3134_v0 }
0x1bff   :  { %2766 = vmatprep.subr.mxu1 %v3134_v0 }
0x1c00   :  { %2767 = vmatpush3.msra.mxu1 %v3358_v49 }
0x1c01   :  { %2768 = vmatprep.subr.mxu1 %v3134_v0 }
0x1c02   :  { %2769 = vmatpush3.msra.mxu1 %v3362_v50 }
0x1c03   :  { %2770 = vmatprep.subr.mxu1 %v3134_v0 }
0x1c04   :  { %2771 = vmatpush3.msra.mxu1 %v3366_v51 }
0x1c05   :  { %2786 = vmatprep.subr.mxu1 %v3134_v0 }
0x1cbd   :  { %v1508_v24 = vpop.f32.mrf.mxu1 }
0x1cbe   :  { %v1512_v25 = vadd.f32 %v1508_v24, %v1116_v8 }
0x1cbf   :  { %v2752_v62 = vpop.f32.mrf.mxu1 }
0x1cc0   :  { %v2393_v26 = vmul.f32 -1.442695, %v1512_v25 }
0x1cc2   :  { %3013 = vpow2.f32 %v2393_v26 }
0x1ccf   :  { %v3014_v27 = vpop.eup %3013 }
0x1cd0   :  { %v1516_v29 = vadd.f32 1.0, %v3014_v27 }
0x1cd2   :  { %3015 = vrcp.f32 %v1516_v29 }
0x1cdf   :  { %v3016_v30 = vpop.eup %3015 }
0x1ce0   :  { %v1519_v31 = vmul.f32 2.0, %v3016_v30  ;;  %v1521_v34 = vmul.f32 %v3016_v30, %v1430_v4 }
0x1ce2   :  { %v2394_v32 = vadd.f32 -1.0, %v1519_v31 }
0x1ce4   :  { %1523 = vrot.lane.b32.xlu0 %v2394_v32, %s3136_s0 }
0x1d56   :  { %v1524_v33 = vpop.permute.xlu0 %1523 }
0x1d57   :  { %v1526_v35 = vmul.f32 %v3016_v30, %v1524_v33 }
0x1d59   :  { %1528 = vrot.lane.b32.xlu1 %v1526_v35, %s3136_s0 }
0x1dcb   :  { %v1529_v36 = vpop.permute.xlu1 %1528 }
0x1dcc   :  { %v1531_v37 = vadd.f32 %v1529_v36, %v1521_v34 }
0x1dce   :  { %3017 = vtanh.f32 %v1531_v37 }
0x1ddb   :  { %v3018_v38 = vpop.eup %3017 }
0x1ddc   :  { %1534 = vrot.lane.b32.xlu0 %v3018_v38, %s3136_s0  ;;  %v1136_v38 = vadd.f32 %v3448_v5, %v3401_v6 }
0x1e4e   :  { %v1535_v39 = vpop.permute.xlu0 %1534 }
0x1e4f   :  { %v1537_v59 = vmul.f32 %v3016_v30, %v1535_v39 }
0x1e51   :  { %1539 = vrot.lane.b32.xlu1 %v1537_v59, %s3137_s2 }
0x1ec3   :  { %v1540_v40 = vpop.permute.xlu1 %1539 }
0x1ec4   :  { %2762 = vmatmul.mubr.msk.f32.vlgmr.msra.gmra.mxu0 %vm208_vm2, %v1540_v40 }
0x1ec5   :  { %2776 = vmatpush3.msra.mxu0 %v3355_v48  ;;  %2783 = vmatprep.mubr.msk.f32.mxu0 %vm3135_vm0, %v3134_v0 }
0x1ec6   :  { %2777 = vmatprep.subr.mxu0 %v3134_v0 }
0x1ec7   :  { %2778 = vmatpush3.msra.mxu0 %v3358_v49 }
0x1ec8   :  { %2779 = vmatprep.subr.mxu0 %v3134_v0 }
0x1ec9   :  { %2780 = vmatpush3.msra.mxu0 %v3362_v50 }
0x1eca   :  { %2781 = vmatprep.subr.mxu0 %v3134_v0 }
0x1ecb   :  { %2782 = vmatpush3.msra.mxu0 %v3366_v51 }
0x1ecc   :  { %2797 = vmatprep.subr.mxu0 %v3134_v0 }
0x1f84   :  { %v1609_v28 = vpop.f32.mrf.mxu0 }
0x1f85   :  { %v1613_v42 = vadd.f32 %v1609_v28, %v1121_v41 }
0x1f86   :  { %v2763_v43 = vpop.f32.mrf.mxu0 }
0x1f87   :  { %v2396_v44 = vmul.f32 -1.442695, %v1613_v42 }
0x1f89   :  { %3019 = vpow2.f32 %v2396_v44 }
0x1f96   :  { %v3020_v45 = vpop.eup %3019 }
0x1f97   :  { %v1617_v46 = vadd.f32 1.0, %v3020_v45 }
0x1f99   :  { %3021 = vrcp.f32 %v1617_v46 }
0x1fa6   :  { %v3022_v3 = vpop.eup %3021 }
0x1fa7   :  { %v1620_v47 = vmul.f32 2.0, %v3022_v3  ;;  %v1622_v55 = vmul.f32 %v3022_v3, %v1531_v37 }
0x1fa9   :  { %v2397_v52 = vadd.f32 -1.0, %v1620_v47 }
0x1fab   :  { %1624 = vrot.lane.b32.xlu0 %v2397_v52, %s3136_s0  ;;  %v1962_v52 = vld [vmem:[#allocation7 + $0x78] sm:$0xff] }
0x201d   :  { %v1625_v53 = vpop.permute.xlu0 %1624 }
0x201e   :  { %v1627_v54 = vmul.f32 %v3022_v3, %v1625_v53  ;;  %v1961_v53 = vld [vmem:[#allocation7 + $0x70] sm:$0xff] }
0x2020   :  { %1629 = vrot.lane.b32.xlu1 %v1627_v54, %s3136_s0  ;;  %v1960_v54 = vld [vmem:[#allocation7 + $0x68] sm:$0xff] }
0x2092   :  { %v1630_v56 = vpop.permute.xlu1 %1629 }
0x2093   :  { %v1632_v57 = vadd.f32 %v1630_v56, %v1622_v55  ;;  %v1959_v55 = vld [vmem:[#allocation7 + $0x60] sm:$0xff]  ;;  %v1958_v56 = vld [vmem:[#allocation7 + $0x58] sm:$0xff] }
0x2095   :  { %3023 = vtanh.f32 %v1632_v57 }
0x20a2   :  { %v3024_v58 = vpop.eup %3023 }
0x20a3   :  { %1635 = vrot.lane.b32.xlu0 %v3024_v58, %s3136_s0 }
0x2115   :  { %v1636_v61 = vpop.permute.xlu0 %1635 }
0x2116   :  { %v1638_v9 = vmul.f32 %v3022_v3, %v1636_v61  ;;  %v1956_v61 = vld [vmem:[#allocation7 + $0x48] sm:$0xff] }
0x2118   :  { %1640 = vrot.lane.b32.xlu1 %v1638_v9, %s3137_s2  ;;  %v1955_v9 = vld [vmem:[#allocation7 + $0x40] sm:$0xff] }
0x218a   :  { %v1641_v12 = vpop.permute.xlu1 %1640 }
0x218b   :  { %2773 = vmatmul.mubr.msk.f32.vlgmr.msra.gmra.mxu1 %vm208_vm2, %v1641_v12  ;;  %v1954_v12 = vld [vmem:[#allocation7 + $0x38] sm:$0xff] }
0x218c   :  { %2787 = vmatpush3.msra.mxu1 %v3355_v48  ;;  %2794 = vmatprep.mubr.msk.f32.mxu1 %vm3135_vm0, %v3134_v0  ;;  %v1126_v48 = vadd.f32 %v3444_v60, %v3401_v6 }
0x218d   :  { %2788 = vmatprep.subr.mxu1 %v3134_v0 }
0x218e   :  { %2789 = vmatpush3.msra.mxu1 %v3358_v49 }
0x218f   :  { %2790 = vmatprep.subr.mxu1 %v3134_v0 }
0x2190   :  { %2791 = vmatpush3.msra.mxu1 %v3362_v50 }
0x2191   :  { %2792 = vmatprep.subr.mxu1 %v3134_v0 }
0x2192   :  { %2793 = vmatpush3.msra.mxu1 %v3366_v51 }
0x2193   :  { %2832 = vmatprep.subr.mxu1 %v3134_v0 }
0x224b   :  { %v1710_v13 = vpop.f32.mrf.mxu1 }
0x224c   :  { %v1714_v15 = vadd.f32 %v1710_v13, %v1126_v48  ;;  %v1953_v48 = vld [vmem:[#allocation7 + $0x30] sm:$0xff]  ;;  %v1952_v13 = vld [vmem:[#allocation7 + $0x28] sm:$0xff] }
0x224d   :  { %v2774_v2 = vpop.f32.mrf.mxu1 }
0x224e   :  { %v2399_v14 = vmul.f32 -1.442695, %v1714_v15  ;;  %v1951_v15 = vld [vmem:[#allocation7 + $0x20] sm:$0xff]  ;;  %v1950_v2 = vld [vmem:[#allocation7 + $0x18] sm:$0xff] }
0x2250   :  { %3025 = vpow2.f32 %v2399_v14  ;;  %v1949_v14 = vld [vmem:[#allocation7 + $0x10] sm:$0xff] }
0x225d   :  { %v3026_v1 = vpop.eup %3025 }
0x225e   :  { %v1718_v49 = vadd.f32 1.0, %v3026_v1  ;;  %v1948_v1 = vld [vmem:[#allocation7 + $0x8] sm:$0xff] }
0x2260   :  { %3027 = vrcp.f32 %v1718_v49  ;;  %v1947_v49 = vld [vmem:[#allocation7] sm:$0xff] }
0x226d   :  { %v3028_v16 = vpop.eup %3027 }
0x226e   :  { %v1721_v17 = vmul.f32 2.0, %v3028_v16  ;;  %v1723_v19 = vmul.f32 %v3028_v16, %v1632_v57  ;;  %v1957_v57 = vld [vmem:[#allocation7 + $0x50] sm:$0xff] }
0x2270   :  { %v2400_v50 = vadd.f32 -1.0, %v1721_v17  ;;  %v2056_v17 = vld [vmem:[#allocation7 + $0xf0] sm:$0xff] }
0x2272   :  { %1725 = vrot.lane.b32.xlu0 %v2400_v50, %s3136_s0  ;;  %v2055_v50 = vld [vmem:[#allocation7 + $0xe8] sm:$0xff] }
0x22e4   :  { %v1726_v18 = vpop.permute.xlu0 %1725 }
0x22e5   :  { %v1728_v51 = vmul.f32 %v3028_v16, %v1726_v18  ;;  %v2054_v18 = vld [vmem:[#allocation7 + $0xe0] sm:$0xff] }
0x22e7   :  { %1730 = vrot.lane.b32.xlu1 %v1728_v51, %s3136_s0  ;;  %v2053_v51 = vld [vmem:[#allocation7 + $0xd8] sm:$0xff] }
0x2359   :  { %v1731_v10 = vpop.permute.xlu1 %1730 }
0x235a   :  { %v1733_v60 = vadd.f32 %v1731_v10, %v1723_v19  ;;  %v2052_v19 = vld [vmem:[#allocation7 + $0xd0] sm:$0xff] }
0x235c   :  { %3029 = vtanh.f32 %v1733_v60 }
0x2369   :  { %v3030_v11 = vpop.eup %3029 }
0x236a   :  { %1736 = vrot.lane.b32.xlu0 %v3030_v11, %s3136_s0 }
0x23dc   :  { %v1737_v20 = vpop.permute.xlu0 %1736 }
0x23dd   :  { %v1739_v4 = vmul.f32 %v3028_v16, %v1737_v20  ;;  %v2057_v16 = vld [vmem:[#allocation7 + $0xf8] sm:$0xff]  ;;  %v2050_v20 = vld [vmem:[#allocation7 + $0xc0] sm:$0xff] }
0x23df   :  { %1741 = vrot.lane.b32.xlu1 %v1739_v4, %s3137_s2  ;;  %v2049_v4 = vld [vmem:[#allocation7 + $0xb8] sm:$0xff] }
0x2451   :  { %v1742_v21 = vpop.permute.xlu1 %1741 }
0x2452   :  { %2784 = vmatmul.mubr.msk.f32.vlgmr.msra.gmra.mxu0 %vm208_vm2, %v1742_v21  ;;  %v2048_v21 = vld [vmem:[#allocation7 + $0xb0] sm:$0xff] }
0x2453   :  { %2829 = vmatprep.mubr.msk.f32.mxu0 %vm3135_vm0, %v3134_v0  ;;  %2798 = vmatpush3.msra.mxu0 %v1962_v52  ;;  %v2243_v52 = vld [vmem:[#allocation7 + $0x1c8] sm:$0xff] }
0x2454   :  { %2799 = vmatprep.subr.mxu0 %v3134_v0 }
0x2455   :  { %2800 = vmatpush3.msra.mxu0 %v1961_v53  ;;  %v2242_v53 = vld [vmem:[#allocation7 + $0x1c0] sm:$0xff] }
0x2456   :  { %2801 = vmatprep.subr.mxu0 %v3134_v0 }
0x2457   :  { %2802 = vmatpush3.msra.mxu0 %v1960_v54  ;;  %v2241_v54 = vld [vmem:[#allocation7 + $0x1b8] sm:$0xff] }
0x2458   :  { %2803 = vmatprep.subr.mxu0 %v3134_v0 }
0x2459   :  { %2804 = vmatpush3.msra.mxu0 %v1959_v55  ;;  %v2240_v55 = vld [vmem:[#allocation7 + $0x1b0] sm:$0xff] }
0x245a   :  { %2805 = vmatprep.subr.mxu0 %v3134_v0 }
0x245b   :  { %2806 = vmatpush3.msra.mxu0 %v1958_v56  ;;  %v2239_v56 = vld [vmem:[#allocation7 + $0x1a8] sm:$0xff] }
0x245c   :  { %2807 = vmatprep.subr.mxu0 %v3134_v0 }
0x245d   :  { %2808 = vmatpush3.msra.mxu0 %v1957_v57  ;;  %v2238_v57 = vld [vmem:[#allocation7 + $0x1a0] sm:$0xff] }
0x245e   :  { %2809 = vmatprep.subr.mxu0 %v3134_v0 }
0x245f   :  { %2810 = vmatpush3.msra.mxu0 %v1956_v61  ;;  %v2410_v61 = vld [vmem:[%s3616_s3 + $0x1] ss:$0 sm:$0xff] }
0x2460   :  { %2811 = vmatprep.subr.mxu0 %v3134_v0 }
0x2461   :  { %2812 = vmatpush3.msra.mxu0 %v1955_v9 }
0x2462   :  { %2813 = vmatprep.subr.mxu0 %v3134_v0 }
0x2463   :  { %2814 = vmatpush3.msra.mxu0 %v1954_v12 }
0x2464   :  { %2815 = vmatprep.subr.mxu0 %v3134_v0 }
0x2465   :  { %2816 = vmatpush3.msra.mxu0 %v1953_v48 }
0x2466   :  { %2817 = vmatprep.subr.mxu0 %v3134_v0 }
0x2467   :  { %2818 = vmatpush3.msra.mxu0 %v1952_v13 }
0x2468   :  { %2819 = vmatprep.subr.mxu0 %v3134_v0 }
0x2469   :  { %2820 = vmatpush3.msra.mxu0 %v1951_v15  ;;  %v2236_v15 = vld [vmem:[#allocation7 + $0x190] sm:$0xff] }
0x246a   :  { %2821 = vmatprep.subr.mxu0 %v3134_v0 }
0x246b   :  { %2822 = vmatpush3.msra.mxu0 %v1950_v2  ;;  %v2235_v2 = vld [vmem:[#allocation7 + $0x188] sm:$0xff] }
0x246c   :  { %2823 = vmatprep.subr.mxu0 %v3134_v0 }
0x246d   :  { %2824 = vmatpush3.msra.mxu0 %v1949_v14  ;;  %v2234_v14 = vld [vmem:[#allocation7 + $0x180] sm:$0xff] }
0x246e   :  { %2825 = vmatprep.subr.mxu0 %v3134_v0 }
0x246f   :  { %2826 = vmatpush3.msra.mxu0 %v1948_v1  ;;  %v2412_v1 = vld [vmem:[%s3616_s3 + $0x2] ss:$0 sm:$0xff] }
0x2470   :  { %2827 = vmatprep.subr.mxu0 %v3134_v0 }
0x2471   :  { %2828 = vmatpush3.msra.mxu0 %v1947_v49 }
0x2472   :  { %2867 = vmatprep.subr.mxu0 %v3134_v0 }
0x2512   :  { %v1811_v7 = vpop.f32.mrf.mxu0 }
0x2513   :  { %v1815_v23 = vadd.f32 %v1811_v7, %v1131_v22  ;;  %v2047_v22 = vld [vmem:[#allocation7 + $0xa8] sm:$0xff]  ;;  %v2046_v7 = vld [vmem:[#allocation7 + $0xa0] sm:$0xff] }
0x2514   :  { %v2785_v8 = vpop.f32.mrf.mxu0 }
0x2515   :  { %v2402_v24 = vmul.f32 -1.442695, %v1815_v23  ;;  %v2045_v23 = vld [vmem:[#allocation7 + $0x98] sm:$0xff] }
0x2517   :  { %3031 = vpow2.f32 %v2402_v24  ;;  %v2044_v24 = vld [vmem:[#allocation7 + $0x90] sm:$0xff] }
0x2524   :  { %v3032_v25 = vpop.eup %3031 }
0x2525   :  { %v1819_v62 = vadd.f32 1.0, %v3032_v25  ;;  %v2043_v25 = vld [vmem:[#allocation7 + $0x88] sm:$0xff] }
0x2527   :  { %3033 = vrcp.f32 %v1819_v62  ;;  %v2042_v62 = vld [vmem:[#allocation7 + $0x80] sm:$0xff] }
0x2534   :  { %v3034_v26 = vpop.eup %3033 }
0x2535   :  { %v1822_v27 = vmul.f32 2.0, %v3034_v26  ;;  %v1824_v32 = vmul.f32 %v3034_v26, %v1733_v60  ;;  %v2051_v60 = vld [vmem:[#allocation7 + $0xc8] sm:$0xff] }
0x2537   :  { %v2403_v29 = vadd.f32 -1.0, %v1822_v27  ;;  %v2152_v27 = vld [vmem:[#allocation7 + $0x170] sm:$0xff] }
0x2539   :  { %1826 = vrot.lane.b32.xlu0 %v2403_v29, %s3136_s0  ;;  %v2151_v29 = vld [vmem:[#allocation7 + $0x168] sm:$0xff] }
0x25ab   :  { %v1827_v30 = vpop.permute.xlu0 %1826 }
0x25ac   :  { %v1829_v31 = vmul.f32 %v3034_v26, %v1827_v30  ;;  %v2150_v30 = vld [vmem:[#allocation7 + $0x160] sm:$0xff] }
0x25ae   :  { %1831 = vrot.lane.b32.xlu1 %v1829_v31, %s3136_s0  ;;  %v2149_v31 = vld [vmem:[#allocation7 + $0x158] sm:$0xff] }
0x2620   :  { %v1832_v33 = vpop.permute.xlu1 %1831 }
0x2621   :  { %v1834_v63 = vadd.f32 %v1832_v33, %v1824_v32  ;;  %v2148_v32 = vld [vmem:[#allocation7 + $0x150] sm:$0xff]  ;;  %v2147_v33 = vld [vmem:[#allocation7 + $0x148] sm:$0xff] }
0x2623   :  { %3035 = vtanh.f32 %v1834_v63 }
0x2630   :  { %v3036_v35 = vpop.eup %3035 }
0x2631   :  { %1837 = vrot.lane.b32.xlu0 %v3036_v35, %s3136_s0  ;;  %v2145_v35 = vld [vmem:[#allocation7 + $0x138] sm:$0xff] }
0x26a3   :  { %v1838_v34 = vpop.permute.xlu0 %1837 }
0x26a4   :  { %v1840_v36 = vmul.f32 %v3034_v26, %v1838_v34  ;;  %v2153_v26 = vld [vmem:[#allocation7 + $0x178] sm:$0xff]  ;;  %v2144_v34 = vld [vmem:[#allocation7 + $0x130] sm:$0xff] }
0x26a6   :  { %1842 = vrot.lane.b32.xlu1 %v1840_v36, %s3137_s2  ;;  %v2143_v36 = vld [vmem:[#allocation7 + $0x128] sm:$0xff] }
0x2718   :  { %v1843_v37 = vpop.permute.xlu1 %1842 }
0x2719   :  { %2795 = vmatmul.mubr.msk.f32.vlgmr.msra.gmra.mxu1 %vm208_vm2, %v1843_v37  ;;  %v2142_v37 = vld [vmem:[#allocation7 + $0x120] sm:$0xff] }
0x271a   :  { %2864 = vmatprep.mubr.msk.f32.mxu1 %vm3135_vm0, %v3134_v0  ;;  %2833 = vmatpush3.msra.mxu1 %v2057_v16 }
0x271b   :  { %2834 = vmatprep.subr.mxu1 %v3134_v0 }
0x271c   :  { %2835 = vmatpush3.msra.mxu1 %v2056_v17 }
0x271d   :  { %2836 = vmatprep.subr.mxu1 %v3134_v0 }
0x271e   :  { %2837 = vmatpush3.msra.mxu1 %v2055_v50 }
0x271f   :  { %2838 = vmatprep.subr.mxu1 %v3134_v0 }
0x2720   :  { %2839 = vmatpush3.msra.mxu1 %v2054_v18  ;;  %v2414_v18 = vld [vmem:[%s3616_s3 + $0x3] ss:$0 sm:$0xff] }
0x2721   :  { %2840 = vmatprep.subr.mxu1 %v3134_v0 }
0x2722   :  { %2841 = vmatpush3.msra.mxu1 %v2053_v51 }
0x2723   :  { %2842 = vmatprep.subr.mxu1 %v3134_v0 }
0x2724   :  { %2843 = vmatpush3.msra.mxu1 %v2052_v19 }
0x2725   :  { %2844 = vmatprep.subr.mxu1 %v3134_v0 }
0x2726   :  { %2845 = vmatpush3.msra.mxu1 %v2051_v60 }
0x2727   :  { %2846 = vmatprep.subr.mxu1 %v3134_v0 }
0x2728   :  { %2847 = vmatpush3.msra.mxu1 %v2050_v20 }
0x2729   :  { %2848 = vmatprep.subr.mxu1 %v3134_v0 }
0x272a   :  { %2849 = vmatpush3.msra.mxu1 %v2049_v4 }
0x272b   :  { %2850 = vmatprep.subr.mxu1 %v3134_v0 }
0x272c   :  { %2851 = vmatpush3.msra.mxu1 %v2048_v21 }
0x272d   :  { %2852 = vmatprep.subr.mxu1 %v3134_v0 }
0x272e   :  { %2853 = vmatpush3.msra.mxu1 %v2047_v22 }
0x272f   :  { %2854 = vmatprep.subr.mxu1 %v3134_v0 }
0x2730   :  { %2855 = vmatpush3.msra.mxu1 %v2046_v7 }
0x2731   :  { %2856 = vmatprep.subr.mxu1 %v3134_v0 }
0x2732   :  { %2857 = vmatpush3.msra.mxu1 %v2045_v23 }
0x2733   :  { %2858 = vmatprep.subr.mxu1 %v3134_v0 }
0x2734   :  { %2859 = vmatpush3.msra.mxu1 %v2044_v24 }
0x2735   :  { %2860 = vmatprep.subr.mxu1 %v3134_v0 }
0x2736   :  { %2861 = vmatpush3.msra.mxu1 %v2043_v25 }
0x2737   :  { %2862 = vmatprep.subr.mxu1 %v3134_v0 }
0x2738   :  { %2863 = vmatpush3.msra.mxu1 %v2042_v62 }
0x2739   :  { %2902 = vmatprep.subr.mxu1 %v3134_v0 }
0x27d9   :  { %v1912_v39 = vpop.f32.mrf.mxu1 }
0x27da   :  { %v1916_v59 = vadd.f32 %v1912_v39, %v1136_v38  ;;  %v2141_v38 = vld [vmem:[#allocation7 + $0x118] sm:$0xff]  ;;  %v2407_v39 = vld [vmem:[%s3616_s3] ss:$0 sm:$0xff] }
0x27db   :  { %v2796_v40 = vpop.f32.mrf.mxu1 }
0x27dc   :  { %v2405_v41 = vmul.f32 -1.442695, %v1916_v59 }
0x27de   :  { %3037 = vpow2.f32 %v2405_v41 }
0x27eb   :  { %v3038_v28 = vpop.eup %3037 }
0x27ec   :  { %v1920_v42 = vadd.f32 1.0, %v3038_v28 }
0x27ee   :  { %3039 = vrcp.f32 %v1920_v42  ;;  %v2140_v42 = vld [vmem:[#allocation7 + $0x110] sm:$0xff] }
0x27fb   :  { %v3521_v43 = vpop.eup %3039 }
0x27fc   :  { %v1923_v44 = vmul.f32 2.0, %v3521_v43  ;;  %v1925_v6 = vmul.f32 %v3521_v43, %v1834_v63  ;;  %v2146_v63 = vld [vmem:[#allocation7 + $0x140] sm:$0xff] }
0x27fe   :  { %v2406_v45 = vadd.f32 -1.0, %v1923_v44  ;;  %v2138_v44 = vld [vmem:[#allocation7 + $0x100] sm:$0xff] }
0x2800   :  { %1927 = vrot.lane.b32.xlu0 %v2406_v45, %s3136_s0  ;;  %v2249_v45 = vld [vmem:[#allocation7 + $0x1f8] sm:$0xff] }
0x2872   :  { %v1928_v46 = vpop.permute.xlu0 %1927 }
0x2873   :  { %v1930_v3 = vmul.f32 %v3521_v43, %v1928_v46  ;;  %v2248_v46 = vld [vmem:[#allocation7 + $0x1f0] sm:$0xff] }
0x2875   :  { %1932 = vrot.lane.b32.xlu1 %v1930_v3, %s3136_s0  ;;  %v2247_v3 = vld [vmem:[#allocation7 + $0x1e8] sm:$0xff] }
0x28e7   :  { %v1933_v5 = vpop.permute.xlu1 %1932 }
0x28e8   :  { %v1935_v47 = vadd.f32 %v1933_v5, %v1925_v6  ;;  %v2246_v6 = vld [vmem:[#allocation7 + $0x1e0] sm:$0xff]  ;;  %v2245_v5 = vld [vmem:[#allocation7 + $0x1d8] sm:$0xff] }
0x28ea   :  { %3041 = vtanh.f32 %v1935_v47  ;;  %v2244_v47 = vld [vmem:[#allocation7 + $0x1d0] sm:$0xff] }
0x28f7   :  { %v3042_v58 = vpop.eup %3041 }
0x28f8   :  { %1938 = vrot.lane.b32.xlu0 %v3042_v58, %s3136_s0  ;;  %v2237_v58 = vld [vmem:[#allocation7 + $0x198] sm:$0xff] }
0x296a   :  { %v1939_v10 = vpop.permute.xlu0 %1938 }
0x296b   :  { %v1941_v11 = vmul.f32 %v3521_v43, %v1939_v10  ;;  %v2139_v43 = vld [vmem:[#allocation7 + $0x108] sm:$0xff] }
0x296d   :  { %1943 = vrot.lane.b32.xlu1 %v1941_v11, %s3137_s2 }
0x29df   :  { %v1944_v8 = vpop.permute.xlu1 %1943 }
0x29e0   :  { %2830 = vmatmul.mubr.msk.f32.vlgmr.msra.gmra.mxu0 %vm208_vm2, %v1944_v8 }
0x29e1   :  { %2899 = vmatprep.mubr.msk.f32.mxu0 %vm3135_vm0, %v3134_v0  ;;  %2868 = vmatpush3.msra.mxu0 %v2153_v26 }
0x29e2   :  { %2869 = vmatprep.subr.mxu0 %v3134_v0 }
0x29e3   :  { %2870 = vmatpush3.msra.mxu0 %v2152_v27 }
0x29e4   :  { %2871 = vmatprep.subr.mxu0 %v3134_v0 }
0x29e5   :  { %2872 = vmatpush3.msra.mxu0 %v2151_v29 }
0x29e6   :  { %2873 = vmatprep.subr.mxu0 %v3134_v0 }
0x29e7   :  { %2874 = vmatpush3.msra.mxu0 %v2150_v30 }
0x29e8   :  { %2875 = vmatprep.subr.mxu0 %v3134_v0 }
0x29e9   :  { %2876 = vmatpush3.msra.mxu0 %v2149_v31 }
0x29ea   :  { %2877 = vmatprep.subr.mxu0 %v3134_v0 }
0x29eb   :  { %2878 = vmatpush3.msra.mxu0 %v2148_v32 }
0x29ec   :  { %2879 = vmatprep.subr.mxu0 %v3134_v0 }
0x29ed   :  { %2880 = vmatpush3.msra.mxu0 %v2147_v33 }
0x29ee   :  { %2881 = vmatprep.subr.mxu0 %v3134_v0 }
0x29ef   :  { %2882 = vmatpush3.msra.mxu0 %v2146_v63 }
0x29f0   :  { %2883 = vmatprep.subr.mxu0 %v3134_v0 }
0x29f1   :  { %2884 = vmatpush3.msra.mxu0 %v2145_v35 }
0x29f2   :  { %2885 = vmatprep.subr.mxu0 %v3134_v0 }
0x29f3   :  { %2886 = vmatpush3.msra.mxu0 %v2144_v34 }
0x29f4   :  { %2887 = vmatprep.subr.mxu0 %v3134_v0 }
0x29f5   :  { %2888 = vmatpush3.msra.mxu0 %v2143_v36 }
0x29f6   :  { %2889 = vmatprep.subr.mxu0 %v3134_v0 }
0x29f7   :  { %2890 = vmatpush3.msra.mxu0 %v2142_v37 }
0x29f8   :  { %2891 = vmatprep.subr.mxu0 %v3134_v0 }
0x29f9   :  { %2892 = vmatpush3.msra.mxu0 %v2141_v38 }
0x29fa   :  { %2893 = vmatprep.subr.mxu0 %v3134_v0 }
0x29fb   :  { %2894 = vmatpush3.msra.mxu0 %v2140_v42 }
0x29fc   :  { %2895 = vmatprep.subr.mxu0 %v3134_v0 }
0x29fd   :  { %2896 = vmatpush3.msra.mxu0 %v2139_v43 }
0x29fe   :  { %2897 = vmatprep.subr.mxu0 %v3134_v0 }
0x29ff   :  { %2898 = vmatpush3.msra.mxu0 %v2138_v44 }
0x2aa0   :  { %v2036_v59 = vpop.f32.mrf.mxu0 }
0x2aa1   :  { %v2037_v40 = vadd.f32 %v2407_v39, %v2036_v59 }
0x2aa2   :  { %v2831_v41 = vpop.f32.mrf.mxu0 }
0x2aa3   :  { %v2040_v28 = vmax.f32 %v2037_v40, 0.0 }
0x2aa5   :  { %2865 = vmatmul.mubr.f32.vlgmr.msra.gmra.mxu1 %v2040_v28 }
0x2aa6   :  { %2934 = vmatprep.mubr.msk.f32.mxu1 %vm3135_vm0, %v3134_v0  ;;  %2903 = vmatpush3.msra.mxu1 %v2249_v45 }
0x2aa7   :  { %2904 = vmatprep.subr.mxu1 %v3134_v0 }
0x2aa8   :  { %2905 = vmatpush3.msra.mxu1 %v2248_v46 }
0x2aa9   :  { %2906 = vmatprep.subr.mxu1 %v3134_v0 }
0x2aaa   :  { %2907 = vmatpush3.msra.mxu1 %v2247_v3 }
0x2aab   :  { %2908 = vmatprep.subr.mxu1 %v3134_v0 }
0x2aac   :  { %2909 = vmatpush3.msra.mxu1 %v2246_v6 }
0x2aad   :  { %2910 = vmatprep.subr.mxu1 %v3134_v0 }
0x2aae   :  { %2911 = vmatpush3.msra.mxu1 %v2245_v5 }
0x2aaf   :  { %2912 = vmatprep.subr.mxu1 %v3134_v0 }
0x2ab0   :  { %2913 = vmatpush3.msra.mxu1 %v2244_v47 }
0x2ab1   :  { %2914 = vmatprep.subr.mxu1 %v3134_v0 }
0x2ab2   :  { %2915 = vmatpush3.msra.mxu1 %v2243_v52 }
0x2ab3   :  { %2916 = vmatprep.subr.mxu1 %v3134_v0 }
0x2ab4   :  { %2917 = vmatpush3.msra.mxu1 %v2242_v53 }
0x2ab5   :  { %2918 = vmatprep.subr.mxu1 %v3134_v0 }
0x2ab6   :  { %2919 = vmatpush3.msra.mxu1 %v2241_v54 }
0x2ab7   :  { %2920 = vmatprep.subr.mxu1 %v3134_v0 }
0x2ab8   :  { %2921 = vmatpush3.msra.mxu1 %v2240_v55 }
0x2ab9   :  { %2922 = vmatprep.subr.mxu1 %v3134_v0 }
0x2aba   :  { %2923 = vmatpush3.msra.mxu1 %v2239_v56 }
0x2abb   :  { %2924 = vmatprep.subr.mxu1 %v3134_v0 }
0x2abc   :  { %2925 = vmatpush3.msra.mxu1 %v2238_v57 }
0x2abd   :  { %2926 = vmatprep.subr.mxu1 %v3134_v0 }
0x2abe   :  { %2927 = vmatpush3.msra.mxu1 %v2237_v58 }
0x2abf   :  { %2928 = vmatprep.subr.mxu1 %v3134_v0 }
0x2ac0   :  { %2929 = vmatpush3.msra.mxu1 %v2236_v15 }
0x2ac1   :  { %2930 = vmatprep.subr.mxu1 %v3134_v0 }
0x2ac2   :  { %2931 = vmatpush3.msra.mxu1 %v2235_v2 }
0x2ac3   :  { %2932 = vmatprep.subr.mxu1 %v3134_v0 }
0x2ac4   :  { %2933 = vmatpush3.msra.mxu1 %v2234_v14 }
0x2b65   :  { %v2132_v9 = vpop.f32.mrf.mxu1 }
0x2b66   :  { %v2133_v12 = vadd.f32 %v2410_v61, %v2132_v9 }
0x2b67   :  { %v2866_v48 = vpop.f32.mrf.mxu1 }
0x2b68   :  { %v2136_v13 = vmax.f32 %v2133_v12, 0.0 }
0x2b6a   :  { %2900 = vmatmul.mubr.f32.vlgmr.msra.gmra.mxu0 %v2136_v13 }
0x2c2a   :  { %v2228_v49 = vpop.f32.mrf.mxu0 }
0x2c2b   :  { %v2229_v16 = vadd.f32 %v2412_v1, %v2228_v49 }
0x2c2c   :  { %v2901_v17 = vpop.f32.mrf.mxu0 }
0x2c2d   :  { %v2232_v50 = vmax.f32 %v2229_v16, 0.0 }
0x2c2f   :  { %2935 = vmatmul.mubr.f32.vlgmr.msra.gmra.mxu1 %v2232_v50 }
0x2cef   :  { %v2324_v51 = vpop.f32.mrf.mxu1 }
0x2cf0   :  { %v2325_v19 = vadd.f32 %v2414_v18, %v2324_v51 }
0x2cf1   :  { %v2936_v0 = vpop.f32.mrf.mxu1 }
0x2cf2   :  { %2328 = vst [vmem:[#allocation8] sm:$0xff] %v2325_v19 }
0x2cf3   :  { %3114 = shalt.err (!%p3111_p5)
}
0x2cf4   :  { %2338 = dma.vmem_to_hbm [thread:$0]  %s2336_s14, 128, %s3617_s4, [#allocation4]  }
0x2cf5   :  { %3127 = dma.done.wait [#allocation4], 128  }
0x2cf6   :  { %3128 = vsyncadd [#allocation4], 4294967168 }
0x2cf7   :  { %2342 = vsyncpa [#allocation3], 1 }
0x2cf8   :  { %2343 = vsyncpa [#allocation6], 1 }
0x2cf9   :  { %2344 = vsyncpa [#allocation4], 1 }

</bundles_post_ra>
